<compile_context>
chip_gen: v6e
topology: v6e:2x2x1
jax: 0.10.0
libtpu: 0.0.40
codegen_flags: <defaults>
</compile_context>

<pallas_src>
import math

import jax
import jax.numpy as jnp
from jax.experimental import pallas as pl
from jax.experimental.pallas import tpu as pltpu

# ----------------------------- config (small) -------------------------------
IMG = 32            # cfg["input_size"]
PATCH = 16
DIM = 32            # backbone hidden dim
NUM_HEADS = 4
DEPTH = 2
ADAPTER_DIM = 16    # cfg["model"]["adapter_dim"]
NUM_CLASSES = 2     # cfg["model"]["num_classes"]
EPS = 1e-5          # nn.LayerNorm default eps
NUM_PATCHES = (IMG // PATCH) ** 2          # 4
SEQ = NUM_PATCHES + 1                      # 5 (CLS + patches)
TPAD = 8                                   # tokens padded to a full sublane group
HEAD_DIM = DIM // NUM_HEADS                # 8


# ------------------------- the single fused kernel ---------------------------
def _make_kernel(layout, B):
    """layout: name -> (slab_width, row_offset, rows, cols); static python data."""
    f32 = jnp.float32
    H, dh = NUM_HEADS, HEAD_DIM

    def kernel(patches_ref, s32_ref, s128_ref, o_ref):
        def P(name):
            width, off, r, c = layout[name]
            ref = s32_ref if width == 32 else s128_ref
            return ref[off:off + r, 0:c]           # static, 8-aligned slice

        def ln(x, g, b):
            mu = jnp.mean(x, axis=-1, keepdims=True)
            var = jnp.mean((x - mu) ** 2, axis=-1, keepdims=True)
            return (x - mu) * jax.lax.rsqrt(var + EPS) * g + b

        def adapter(x, pre):
            h = ln(x, P(pre + "ln_g"), P(pre + "ln_b"))
            h = jax.nn.gelu(
                jnp.dot(h, P(pre + "wd"), preferred_element_type=f32) + P(pre + "bd"),
                approximate=True)
            return x + jnp.dot(h, P(pre + "wu"), preferred_element_type=f32) + P(pre + "bu")

        # ---- patch embed; "base" already folds cls + pos + pe_b ----
        x = (jnp.dot(patches_ref[...], P("pe_w"), preferred_element_type=f32)
             + P("base"))                                            # [B*TPAD, D]

        # constant masks / selectors (loaded once, shared by both blocks)
        hd_mask = P("hd_mask")       # [H*R, D] : 1 where lane-head == row-group head
        attn_bias = P("attn_bias")   # [R, H*R] : 0 allowed, -1e30 cross-batch / pad key
        grp_sum = P("grp_sum")       # [H*R, H*R]: block-diag ones (per-head sum)

        # ---- transformer blocks (pre-LN) ----
        for i in range(DEPTH):
            pre = f"blk{i}_"
            h1 = ln(x, P(pre + "ln1_g"), P(pre + "ln1_b"))
            q = jnp.dot(h1, P(pre + "q_w"), preferred_element_type=f32) + P(pre + "q_b")
            k = jnp.dot(h1, P(pre + "k_w"), preferred_element_type=f32) + P(pre + "k_b")
            v = jnp.dot(h1, P(pre + "v_w"), preferred_element_type=f32) + P(pre + "v_b")

            # all-batch, all-head attention via block-diagonal replication
            k_heads = jnp.concatenate([k] * H, axis=0) * hd_mask     # [H*R, D]
            v_heads = jnp.concatenate([v] * H, axis=0) * hd_mask     # [H*R, D]
            s = jax.lax.dot_general(                                  # [R, H*R]
                q, k_heads, dimension_numbers=(((1,), (1,)), ((), ())),
                preferred_element_type=f32) + attn_bias
            s = s - jnp.max(s, axis=-1, keepdims=True)
            p = jnp.exp(s)
            p = p / jnp.dot(p, grp_sum, preferred_element_type=f32)  # exact per-head softmax
            o = jnp.dot(p, v_heads, preferred_element_type=f32)      # [R, D] heads concatenated
            x = x + (jnp.dot(o, P(pre + "proj_w"), preferred_element_type=f32)
                     + P(pre + "proj_b"))

            h2 = ln(x, P(pre + "ln2_g"), P(pre + "ln2_b"))
            h2 = jax.nn.gelu(
                jnp.dot(h2, P(pre + "fc1_w"), preferred_element_type=f32) + P(pre + "fc1_b"),
                approximate=True)
            x = x + jnp.dot(h2, P(pre + "fc2_w"), preferred_element_type=f32) + P(pre + "fc2_b")

        x = ln(x, P("ln_g"), P("ln_b"))                               # final backbone LN

        # ---- adapters + classifier head ----
        cls_tok = jnp.dot(P("sel_cls"), x, preferred_element_type=f32)       # [B, D]
        g_out = adapter(cls_tok, "ga_")
        l_full = adapter(x + P("la_pos"), "la_")                              # [B*TPAD, D]
        l_mean = jnp.dot(P("sel_pmean"), l_full, preferred_element_type=f32)  # [B, D]
        y = ln(g_out + l_mean, P("head_ln_g"), P("head_ln_b"))
        logits = jnp.dot(y, P("head_w"), preferred_element_type=f32) + P("head_b")
        o_ref[...] = logits.astype(o_ref.dtype)

    return kernel


# ------------------------- host-side packing (once, at init) ------------------
def pack_params(params, B):
    """Fold/pre-split params, add data-independent constants, pack into 2 slabs."""
    D, dh, T, N, H = DIM, HEAD_DIM, SEQ, NUM_PATCHES, NUM_HEADS
    R = B * TPAD
    scale = 1.0 / math.sqrt(dh)
    entries = []

    def add(name, a):
        a = jnp.asarray(a, jnp.float32)
        if a.ndim == 1:
            a = a.reshape(1, -1)
        entries.append((name, a))

    # ---- backbone ----
    add("pe_w", params["pe_w"])
    cls = params["cls"].reshape(1, D)
    pos = params["pos"].reshape(SEQ, D)
    pe_b = params["pe_b"].reshape(1, D)
    base = jnp.zeros((B, TPAD, D), jnp.float32)
    base = base.at[:, 0, :].set(cls[0] + pos[0])          # CLS slot
    base = base.at[:, 1:SEQ, :].set(pos[1:SEQ] + pe_b)    # patch slots
    add("base", base.reshape(R, D))
    add("ln_g", params["ln_g"]); add("ln_b", params["ln_b"])

    for i, blk in enumerate(params["blocks"]):
        p = f"blk{i}_"
        qkv_w, qkv_b = blk["qkv_w"], blk["qkv_b"]
        add(p + "ln1_g", blk["ln1_g"]); add(p + "ln1_b", blk["ln1_b"])
        add(p + "q_w", qkv_w[:, 0:D] * scale); add(p + "q_b", qkv_b[0:D] * scale)
        add(p + "k_w", qkv_w[:, D:2 * D]);     add(p + "k_b", qkv_b[D:2 * D])
        add(p + "v_w", qkv_w[:, 2 * D:3 * D]); add(p + "v_b", qkv_b[2 * D:3 * D])
        add(p + "proj_w", blk["proj_w"]); add(p + "proj_b", blk["proj_b"])
        add(p + "ln2_g", blk["ln2_g"]); add(p + "ln2_b", blk["ln2_b"])
        add(p + "fc1_w", blk["fc1_w"]); add(p + "fc1_b", blk["fc1_b"])
        add(p + "fc2_w", blk["fc2_w"]); add(p + "fc2_b", blk["fc2_b"])

    for nm, sub in (("ga_", params["ga"]), ("la_", params["la"])):
        add(nm + "ln_g", sub["ln_g"]); add(nm + "ln_b", sub["ln_b"])
        add(nm + "wd", sub["wd"]); add(nm + "bd", sub["bd"])
        add(nm + "wu", sub["wu"]); add(nm + "bu", sub["bu"])
    lap = jnp.zeros((B, TPAD, D), jnp.float32)
    lap = lap.at[:, 1:SEQ, :].set(params["la"]["pos"].reshape(N, D))
    add("la_pos", lap.reshape(R, D))

    add("head_ln_g", params["head"]["ln_g"]); add("head_ln_b", params["head"]["ln_b"])
    add("head_w", params["head"]["w"]); add("head_b", params["head"]["b"])

    # ---- data-independent constants (masks / selectors) ----
    col = jnp.arange(H * R)
    add("hd_mask", (col[:, None] // R == jnp.arange(D)[None, :] // dh).astype(jnp.float32))
    qrow = jnp.arange(R)
    key = col % R
    allowed = ((qrow[:, None] // TPAD) == (key[None, :] // TPAD)) & ((key[None, :] % TPAD) < T)
    add("attn_bias", jnp.where(allowed, 0.0, -1e30).astype(jnp.float32))       # [R, H*R]
    add("grp_sum", (col[:, None] // R == col[None, :] // R).astype(jnp.float32))
    brow = jnp.arange(B)
    xcol = jnp.arange(R)
    add("sel_cls", (xcol[None, :] == brow[:, None] * TPAD).astype(jnp.float32))
    tok = xcol % TPAD
    sel_p = ((xcol[None, :] // TPAD == brow[:, None])
             & (tok[None, :] >= 1) & (tok[None, :] < T)).astype(jnp.float32) / N
    add("sel_pmean", sel_p)

    # ---- pack into two row-aligned slabs (width 32 and width 128) ----
    layout = {}
    pieces = {32: [], 128: []}
    offs = {32: 0, 128: 0}
    for name, a in entries:
        r, c = a.shape
        width = 32 if c <= 32 else 128
        rp = ((r + 7) // 8) * 8
        buf = jnp.zeros((rp, width), jnp.float32).at[:r, :c].set(a)
        layout[name] = (width, offs[width], r, c)
        pieces[width].append(buf)
        offs[width] += rp
    slab32 = jnp.concatenate(pieces[32], axis=0)
    slab128 = (jnp.concatenate(pieces[128], axis=0)
               if pieces[128] else jnp.zeros((8, 128), jnp.float32))
    return slab32, slab128, layout


# ------------------------------- plain-JAX glue -------------------------------
def extract_patches_padded(x):
    """NCHW image -> [B*TPAD, C*P*P]; per batch: row0=CLS slot(0), rows1..N=patches,
    rows N+1..TPAD-1 = 0 (padding).  Flattening matches Conv2d (c, kh, kw) order."""
    B, C, Hh, Ww = x.shape
    hp, wp = Hh // PATCH, Ww // PATCH
    p = x.reshape(B, C, hp, PATCH, wp, PATCH)
    p = p.transpose(0, 2, 4, 1, 3, 5).reshape(B, hp * wp, C * PATCH * PATCH)
    out = jnp.zeros((B, TPAD, C * PATCH * PATCH), x.dtype)
    out = out.at[:, 1:1 + hp * wp, :].set(p)
    return out.reshape(B * TPAD, C * PATCH * PATCH)


def make_forward(layout, B):
    kernel = _make_kernel(layout, B)

    def forward(slab32, slab128, x):
        patches = extract_patches_padded(x.astype(jnp.float32))
        # One fused kernel, no grid: 3 full-array VMEM blocks in, logits out.
        return pl.pallas_call(
            kernel,
            in_specs=[pl.BlockSpec(memory_space=pltpu.MemorySpace.VMEM)] * 3,
            out_specs=pl.BlockSpec(memory_space=pltpu.MemorySpace.VMEM),
            out_shape=jax.ShapeDtypeStruct((B, NUM_CLASSES), jnp.float32),
        )(patches, slab32, slab128)

    return forward


# --------------------------- deterministic parameters -------------------------
def init_params(key):
    keys = list(jax.random.split(key, 64))
    it = iter(keys)
    nk = lambda: next(it)

    def dense(fan_in, fan_out):
        return jax.random.normal(nk(), (fan_in, fan_out), jnp.float32) * 0.02

    ones = lambda n: jnp.ones((n,), jnp.float32)
    zeros = lambda n: jnp.zeros((n,), jnp.float32)

    params = {
        "pe_w": dense(3 * PATCH * PATCH, DIM),
        "pe_b": zeros(DIM),
        "cls": jax.random.normal(nk(), (1, 1, DIM), jnp.float32) * 0.02,
        "pos": jax.random.normal(nk(), (1, SEQ, DIM), jnp.float32) * 0.02,
        "ln_g": ones(DIM), "ln_b": zeros(DIM),
        "blocks": [],
    }
    for _ in range(DEPTH):
        params["blocks"].append({
            "ln1_g": ones(DIM), "ln1_b": zeros(DIM),
            "qkv_w": dense(DIM, 3 * DIM), "qkv_b": zeros(3 * DIM),
            "proj_w": dense(DIM, DIM), "proj_b": zeros(DIM),
            "ln2_g": ones(DIM), "ln2_b": zeros(DIM),
            "fc1_w": dense(DIM, 4 * DIM), "fc1_b": zeros(4 * DIM),
            "fc2_w": dense(4 * DIM, DIM), "fc2_b": zeros(DIM),
        })
    params["ga"] = {
        "ln_g": ones(DIM), "ln_b": zeros(DIM),
        "wd": dense(DIM, ADAPTER_DIM), "bd": zeros(ADAPTER_DIM),
        "wu": dense(ADAPTER_DIM, DIM), "bu": zeros(DIM),
    }
    params["la"] = {
        "pos": jax.random.normal(nk(), (1, NUM_PATCHES, DIM), jnp.float32) * 0.02,
        "ln_g": ones(DIM), "ln_b": zeros(DIM),
        "wd": dense(DIM, ADAPTER_DIM), "bd": zeros(ADAPTER_DIM),
        "wu": dense(ADAPTER_DIM, DIM), "bu": zeros(DIM),
    }
    params["head"] = {
        "ln_g": ones(DIM), "ln_b": zeros(DIM),
        "w": dense(DIM, NUM_CLASSES), "b": zeros(NUM_CLASSES),
    }
    return params


# ------------------------------------ main ------------------------------------
if __name__ == "__main__":
    key = jax.random.PRNGKey(0)
    pkey, xkey = jax.random.split(key)
    params = init_params(pkey)
    x = jax.random.normal(xkey, (2, 3, IMG, IMG), jnp.float32)   # [B, 3, H, W] NCHW
    B = x.shape[0]

    # Pack once at init (folds, splits, constants); forward is jitted separately.
    slab32, slab128, layout = pack_params(params, B)
    forward = jax.jit(make_forward(layout, B))

    logits = forward(slab32, slab128, x)
    logits = jax.block_until_ready(logits)

    assert logits.shape == (B, NUM_CLASSES), logits.shape
    assert bool(jnp.all(jnp.isfinite(logits)))
    print("KERNEL_OK")
</pallas_src>

<mosaic_0001>
module attributes {stable_mosaic.version = 11 : i64} {
  func.func @kernel(%arg0: memref<16x768xf32, #tpu.memory_space<vmem>>, %arg1: memref<1768x32xf32, #tpu.memory_space<vmem>>, %arg2: memref<160x128xf32, #tpu.memory_space<vmem>>, %arg3: memref<2x2xf32, #tpu.memory_space<vmem>>) attributes {dimension_semantics = [], scalar_prefetch = 0 : i64, scratch_operands = 0 : i64, tpu.core_type = #tpu.core_type<tc>} {
    %c0 = arith.constant 0 : index
    %c0_0 = arith.constant 0 : index
    %0 = vector.load %arg0[%c0, %c0_0] : memref<16x768xf32, #tpu.memory_space<vmem>>, vector<16x768xf32>
    %c0_1 = arith.constant 0 : index
    %c0_2 = arith.constant 0 : index
    %1 = vector.load %arg1[%c0_1, %c0_2] : memref<1768x32xf32, #tpu.memory_space<vmem>>, vector<768x32xf32>
    %cst = arith.constant dense<0.000000e+00> : vector<16x32xf32>
    %2 = tpu.matmul %0, %1, %cst {dimension_numbers = #tpu.dot_dimension_numbers<[1], [0], [0], [1], [0, 0, 1, 1], [], []>} : vector<16x768xf32>, vector<768x32xf32>, vector<16x32xf32> -> vector<16x32xf32>
    %c768 = arith.constant 768 : index
    %c0_3 = arith.constant 0 : index
    %3 = vector.load %arg1[%c768, %c0_3] : memref<1768x32xf32, #tpu.memory_space<vmem>>, vector<16x32xf32>
    %4 = arith.addf %2, %3 : vector<16x32xf32>
    %c1688 = arith.constant 1688 : index
    %c0_4 = arith.constant 0 : index
    %5 = vector.load %arg1[%c1688, %c0_4] : memref<1768x32xf32, #tpu.memory_space<vmem>>, vector<64x32xf32>
    %c80 = arith.constant 80 : index
    %c0_5 = arith.constant 0 : index
    %6 = vector.load %arg2[%c80, %c0_5] : memref<160x128xf32, #tpu.memory_space<vmem>>, vector<16x64xf32>
    %c96 = arith.constant 96 : index
    %c0_6 = arith.constant 0 : index
    %7 = vector.load %arg2[%c96, %c0_6] : memref<160x128xf32, #tpu.memory_space<vmem>>, vector<64x64xf32>
    %c800 = arith.constant 800 : index
    %c0_7 = arith.constant 0 : index
    %8 = vector.load %arg1[%c800, %c0_7] : memref<1768x32xf32, #tpu.memory_space<vmem>>, vector<1x32xf32>
    %c808 = arith.constant 808 : index
    %c0_8 = arith.constant 0 : index
    %9 = vector.load %arg1[%c808, %c0_8] : memref<1768x32xf32, #tpu.memory_space<vmem>>, vector<1x32xf32>
    %cst_9 = arith.constant dense<0.000000e+00> : vector<16xf32>
    %10 = vector.multi_reduction <add>, %4, %cst_9 [1] : vector<16x32xf32> to vector<16xf32>
    %11 = vector.shape_cast %10 : vector<16xf32> to vector<16x1xf32>
    %cst_10 = arith.constant 3.200000e+01 : f32
    %12 = vector.broadcast %cst_10 : f32 to vector<16x1xf32>
    %13 = arith.divf %11, %12 : vector<16x1xf32>
    %14 = vector.broadcast %13 : vector<16x1xf32> to vector<16x32xf32>
    %15 = arith.subf %4, %14 : vector<16x32xf32>
    %16 = arith.mulf %15, %15 : vector<16x32xf32>
    %cst_11 = arith.constant dense<0.000000e+00> : vector<16xf32>
    %17 = vector.multi_reduction <add>, %16, %cst_11 [1] : vector<16x32xf32> to vector<16xf32>
    %18 = vector.shape_cast %17 : vector<16xf32> to vector<16x1xf32>
    %cst_12 = arith.constant 3.200000e+01 : f32
    %19 = vector.broadcast %cst_12 : f32 to vector<16x1xf32>
    %20 = arith.divf %18, %19 : vector<16x1xf32>
    %21 = vector.broadcast %13 : vector<16x1xf32> to vector<16x32xf32>
    %22 = arith.subf %4, %21 : vector<16x32xf32>
    %cst_13 = arith.constant 9.99999974E-6 : f32
    %23 = vector.broadcast %cst_13 : f32 to vector<16x1xf32>
    %24 = arith.addf %20, %23 : vector<16x1xf32>
    %25 = math.rsqrt %24 : vector<16x1xf32>
    %26 = vector.broadcast %25 : vector<16x1xf32> to vector<16x32xf32>
    %27 = arith.mulf %22, %26 : vector<16x32xf32>
    %28 = vector.broadcast %8 : vector<1x32xf32> to vector<16x32xf32>
    %29 = arith.mulf %27, %28 : vector<16x32xf32>
    %30 = vector.broadcast %9 : vector<1x32xf32> to vector<16x32xf32>
    %31 = arith.addf %29, %30 : vector<16x32xf32>
    %c816 = arith.constant 816 : index
    %c0_14 = arith.constant 0 : index
    %32 = vector.load %arg1[%c816, %c0_14] : memref<1768x32xf32, #tpu.memory_space<vmem>>, vector<32x32xf32>
    %cst_15 = arith.constant dense<0.000000e+00> : vector<16x32xf32>
    %33 = tpu.matmul %31, %32, %cst_15 {dimension_numbers = #tpu.dot_dimension_numbers<[1], [0], [0], [1], [0, 0, 1, 1], [], []>} : vector<16x32xf32>, vector<32x32xf32>, vector<16x32xf32> -> vector<16x32xf32>
    %c848 = arith.constant 848 : index
    %c0_16 = arith.constant 0 : index
    %34 = vector.load %arg1[%c848, %c0_16] : memref<1768x32xf32, #tpu.memory_space<vmem>>, vector<1x32xf32>
    %35 = vector.broadcast %34 : vector<1x32xf32> to vector<16x32xf32>
    %36 = arith.addf %33, %35 : vector<16x32xf32>
    %c856 = arith.constant 856 : index
    %c0_17 = arith.constant 0 : index
    %37 = vector.load %arg1[%c856, %c0_17] : memref<1768x32xf32, #tpu.memory_space<vmem>>, vector<32x32xf32>
    %cst_18 = arith.constant dense<0.000000e+00> : vector<16x32xf32>
    %38 = tpu.matmul %31, %37, %cst_18 {dimension_numbers = #tpu.dot_dimension_numbers<[1], [0], [0], [1], [0, 0, 1, 1], [], []>} : vector<16x32xf32>, vector<32x32xf32>, vector<16x32xf32> -> vector<16x32xf32>
    %c888 = arith.constant 888 : index
    %c0_19 = arith.constant 0 : index
    %39 = vector.load %arg1[%c888, %c0_19] : memref<1768x32xf32, #tpu.memory_space<vmem>>, vector<1x32xf32>
    %40 = vector.broadcast %39 : vector<1x32xf32> to vector<16x32xf32>
    %41 = arith.addf %38, %40 : vector<16x32xf32>
    %c896 = arith.constant 896 : index
    %c0_20 = arith.constant 0 : index
    %42 = vector.load %arg1[%c896, %c0_20] : memref<1768x32xf32, #tpu.memory_space<vmem>>, vector<32x32xf32>
    %cst_21 = arith.constant dense<0.000000e+00> : vector<16x32xf32>
    %43 = tpu.matmul %31, %42, %cst_21 {dimension_numbers = #tpu.dot_dimension_numbers<[1], [0], [0], [1], [0, 0, 1, 1], [], []>} : vector<16x32xf32>, vector<32x32xf32>, vector<16x32xf32> -> vector<16x32xf32>
    %c928 = arith.constant 928 : index
    %c0_22 = arith.constant 0 : index
    %44 = vector.load %arg1[%c928, %c0_22] : memref<1768x32xf32, #tpu.memory_space<vmem>>, vector<1x32xf32>
    %45 = vector.broadcast %44 : vector<1x32xf32> to vector<16x32xf32>
    %46 = arith.addf %43, %45 : vector<16x32xf32>
    %47 = tpu.concatenate %41, %41, %41, %41 in 0 : vector<16x32xf32>, vector<16x32xf32>, vector<16x32xf32>, vector<16x32xf32> -> vector<64x32xf32>
    %48 = arith.mulf %47, %5 : vector<64x32xf32>
    %49 = tpu.concatenate %46, %46, %46, %46 in 0 : vector<16x32xf32>, vector<16x32xf32>, vector<16x32xf32>, vector<16x32xf32> -> vector<64x32xf32>
    %50 = arith.mulf %49, %5 : vector<64x32xf32>
    %cst_23 = arith.constant dense<0.000000e+00> : vector<16x64xf32>
    %51 = tpu.matmul %36, %48, %cst_23 {dimension_numbers = #tpu.dot_dimension_numbers<[1], [1], [0], [0], [0, 0, 1, 0], [], []>} : vector<16x32xf32>, vector<64x32xf32>, vector<16x64xf32> -> vector<16x64xf32>
    %52 = arith.addf %51, %6 : vector<16x64xf32>
    %cst_24 = arith.constant dense<0xFF800000> : vector<16xf32>
    %53 = vector.multi_reduction <maximumf>, %52, %cst_24 [1] : vector<16x64xf32> to vector<16xf32>
    %54 = vector.shape_cast %53 : vector<16xf32> to vector<16x1xf32>
    %55 = vector.broadcast %54 : vector<16x1xf32> to vector<16x64xf32>
    %56 = arith.subf %52, %55 : vector<16x64xf32>
    %57 = math.exp %56 : vector<16x64xf32>
    %cst_25 = arith.constant dense<0.000000e+00> : vector<16x64xf32>
    %58 = tpu.matmul %57, %7, %cst_25 {dimension_numbers = #tpu.dot_dimension_numbers<[1], [0], [0], [1], [0, 0, 1, 1], [], []>} : vector<16x64xf32>, vector<64x64xf32>, vector<16x64xf32> -> vector<16x64xf32>
    %59 = arith.divf %57, %58 : vector<16x64xf32>
    %cst_26 = arith.constant dense<0.000000e+00> : vector<16x32xf32>
    %60 = tpu.matmul %59, %50, %cst_26 {dimension_numbers = #tpu.dot_dimension_numbers<[1], [0], [0], [1], [0, 0, 1, 1], [], []>} : vector<16x64xf32>, vector<64x32xf32>, vector<16x32xf32> -> vector<16x32xf32>
    %c936 = arith.constant 936 : index
    %c0_27 = arith.constant 0 : index
    %61 = vector.load %arg1[%c936, %c0_27] : memref<1768x32xf32, #tpu.memory_space<vmem>>, vector<32x32xf32>
    %cst_28 = arith.constant dense<0.000000e+00> : vector<16x32xf32>
    %62 = tpu.matmul %60, %61, %cst_28 {dimension_numbers = #tpu.dot_dimension_numbers<[1], [0], [0], [1], [0, 0, 1, 1], [], []>} : vector<16x32xf32>, vector<32x32xf32>, vector<16x32xf32> -> vector<16x32xf32>
    %c968 = arith.constant 968 : index
    %c0_29 = arith.constant 0 : index
    %63 = vector.load %arg1[%c968, %c0_29] : memref<1768x32xf32, #tpu.memory_space<vmem>>, vector<1x32xf32>
    %64 = vector.broadcast %63 : vector<1x32xf32> to vector<16x32xf32>
    %65 = arith.addf %62, %64 : vector<16x32xf32>
    %66 = arith.addf %4, %65 : vector<16x32xf32>
    %c976 = arith.constant 976 : index
    %c0_30 = arith.constant 0 : index
    %67 = vector.load %arg1[%c976, %c0_30] : memref<1768x32xf32, #tpu.memory_space<vmem>>, vector<1x32xf32>
    %c984 = arith.constant 984 : index
    %c0_31 = arith.constant 0 : index
    %68 = vector.load %arg1[%c984, %c0_31] : memref<1768x32xf32, #tpu.memory_space<vmem>>, vector<1x32xf32>
    %cst_32 = arith.constant dense<0.000000e+00> : vector<16xf32>
    %69 = vector.multi_reduction <add>, %66, %cst_32 [1] : vector<16x32xf32> to vector<16xf32>
    %70 = vector.shape_cast %69 : vector<16xf32> to vector<16x1xf32>
    %cst_33 = arith.constant 3.200000e+01 : f32
    %71 = vector.broadcast %cst_33 : f32 to vector<16x1xf32>
    %72 = arith.divf %70, %71 : vector<16x1xf32>
    %73 = vector.broadcast %72 : vector<16x1xf32> to vector<16x32xf32>
    %74 = arith.subf %66, %73 : vector<16x32xf32>
    %75 = arith.mulf %74, %74 : vector<16x32xf32>
    %cst_34 = arith.constant dense<0.000000e+00> : vector<16xf32>
    %76 = vector.multi_reduction <add>, %75, %cst_34 [1] : vector<16x32xf32> to vector<16xf32>
    %77 = vector.shape_cast %76 : vector<16xf32> to vector<16x1xf32>
    %cst_35 = arith.constant 3.200000e+01 : f32
    %78 = vector.broadcast %cst_35 : f32 to vector<16x1xf32>
    %79 = arith.divf %77, %78 : vector<16x1xf32>
    %80 = vector.broadcast %72 : vector<16x1xf32> to vector<16x32xf32>
    %81 = arith.subf %66, %80 : vector<16x32xf32>
    %cst_36 = arith.constant 9.99999974E-6 : f32
    %82 = vector.broadcast %cst_36 : f32 to vector<16x1xf32>
    %83 = arith.addf %79, %82 : vector<16x1xf32>
    %84 = math.rsqrt %83 : vector<16x1xf32>
    %85 = vector.broadcast %84 : vector<16x1xf32> to vector<16x32xf32>
    %86 = arith.mulf %81, %85 : vector<16x32xf32>
    %87 = vector.broadcast %67 : vector<1x32xf32> to vector<16x32xf32>
    %88 = arith.mulf %86, %87 : vector<16x32xf32>
    %89 = vector.broadcast %68 : vector<1x32xf32> to vector<16x32xf32>
    %90 = arith.addf %88, %89 : vector<16x32xf32>
    %c0_37 = arith.constant 0 : index
    %c0_38 = arith.constant 0 : index
    %91 = vector.load %arg2[%c0_37, %c0_38] : memref<160x128xf32, #tpu.memory_space<vmem>>, vector<32x128xf32>
    %cst_39 = arith.constant dense<0.000000e+00> : vector<16x128xf32>
    %92 = tpu.matmul %90, %91, %cst_39 {dimension_numbers = #tpu.dot_dimension_numbers<[1], [0], [0], [1], [0, 0, 1, 1], [], []>} : vector<16x32xf32>, vector<32x128xf32>, vector<16x128xf32> -> vector<16x128xf32>
    %c32 = arith.constant 32 : index
    %c0_40 = arith.constant 0 : index
    %93 = vector.load %arg2[%c32, %c0_40] : memref<160x128xf32, #tpu.memory_space<vmem>>, vector<1x128xf32>
    %94 = vector.broadcast %93 : vector<1x128xf32> to vector<16x128xf32>
    %95 = arith.addf %92, %94 : vector<16x128xf32>
    %96 = arith.mulf %95, %95 : vector<16x128xf32>
    %97 = arith.mulf %95, %96 : vector<16x128xf32>
    %cst_41 = arith.constant 4.471500e-02 : f32
    %98 = vector.broadcast %cst_41 : f32 to vector<16x128xf32>
    %99 = arith.mulf %98, %97 : vector<16x128xf32>
    %100 = arith.addf %95, %99 : vector<16x128xf32>
    %cst_42 = arith.constant 0.797884583 : f32
    %101 = vector.broadcast %cst_42 : f32 to vector<16x128xf32>
    %102 = arith.mulf %101, %100 : vector<16x128xf32>
    %103 = math.tanh %102 : vector<16x128xf32>
    %cst_43 = arith.constant 1.000000e+00 : f32
    %104 = vector.broadcast %cst_43 : f32 to vector<16x128xf32>
    %105 = arith.addf %104, %103 : vector<16x128xf32>
    %cst_44 = arith.constant 5.000000e-01 : f32
    %106 = vector.broadcast %cst_44 : f32 to vector<16x128xf32>
    %107 = arith.mulf %106, %105 : vector<16x128xf32>
    %108 = arith.mulf %95, %107 : vector<16x128xf32>
    %c992 = arith.constant 992 : index
    %c0_45 = arith.constant 0 : index
    %109 = vector.load %arg1[%c992, %c0_45] : memref<1768x32xf32, #tpu.memory_space<vmem>>, vector<128x32xf32>
    %cst_46 = arith.constant dense<0.000000e+00> : vector<16x32xf32>
    %110 = tpu.matmul %108, %109, %cst_46 {dimension_numbers = #tpu.dot_dimension_numbers<[1], [0], [0], [1], [0, 0, 1, 1], [], []>} : vector<16x128xf32>, vector<128x32xf32>, vector<16x32xf32> -> vector<16x32xf32>
    %111 = arith.addf %66, %110 : vector<16x32xf32>
    %c1120 = arith.constant 1120 : index
    %c0_47 = arith.constant 0 : index
    %112 = vector.load %arg1[%c1120, %c0_47] : memref<1768x32xf32, #tpu.memory_space<vmem>>, vector<1x32xf32>
    %113 = vector.broadcast %112 : vector<1x32xf32> to vector<16x32xf32>
    %114 = arith.addf %111, %113 : vector<16x32xf32>
    %c1128 = arith.constant 1128 : index
    %c0_48 = arith.constant 0 : index
    %115 = vector.load %arg1[%c1128, %c0_48] : memref<1768x32xf32, #tpu.memory_space<vmem>>, vector<1x32xf32>
    %c1136 = arith.constant 1136 : index
    %c0_49 = arith.constant 0 : index
    %116 = vector.load %arg1[%c1136, %c0_49] : memref<1768x32xf32, #tpu.memory_space<vmem>>, vector<1x32xf32>
    %cst_50 = arith.constant dense<0.000000e+00> : vector<16xf32>
    %117 = vector.multi_reduction <add>, %114, %cst_50 [1] : vector<16x32xf32> to vector<16xf32>
    %118 = vector.shape_cast %117 : vector<16xf32> to vector<16x1xf32>
    %cst_51 = arith.constant 3.200000e+01 : f32
    %119 = vector.broadcast %cst_51 : f32 to vector<16x1xf32>
    %120 = arith.divf %118, %119 : vector<16x1xf32>
    %121 = vector.broadcast %120 : vector<16x1xf32> to vector<16x32xf32>
    %122 = arith.subf %114, %121 : vector<16x32xf32>
    %123 = arith.mulf %122, %122 : vector<16x32xf32>
    %cst_52 = arith.constant dense<0.000000e+00> : vector<16xf32>
    %124 = vector.multi_reduction <add>, %123, %cst_52 [1] : vector<16x32xf32> to vector<16xf32>
    %125 = vector.shape_cast %124 : vector<16xf32> to vector<16x1xf32>
    %cst_53 = arith.constant 3.200000e+01 : f32
    %126 = vector.broadcast %cst_53 : f32 to vector<16x1xf32>
    %127 = arith.divf %125, %126 : vector<16x1xf32>
    %128 = vector.broadcast %120 : vector<16x1xf32> to vector<16x32xf32>
    %129 = arith.subf %114, %128 : vector<16x32xf32>
    %cst_54 = arith.constant 9.99999974E-6 : f32
    %130 = vector.broadcast %cst_54 : f32 to vector<16x1xf32>
    %131 = arith.addf %127, %130 : vector<16x1xf32>
    %132 = math.rsqrt %131 : vector<16x1xf32>
    %133 = vector.broadcast %132 : vector<16x1xf32> to vector<16x32xf32>
    %134 = arith.mulf %129, %133 : vector<16x32xf32>
    %135 = vector.broadcast %115 : vector<1x32xf32> to vector<16x32xf32>
    %136 = arith.mulf %134, %135 : vector<16x32xf32>
    %137 = vector.broadcast %116 : vector<1x32xf32> to vector<16x32xf32>
    %138 = arith.addf %136, %137 : vector<16x32xf32>
    %c1144 = arith.constant 1144 : index
    %c0_55 = arith.constant 0 : index
    %139 = vector.load %arg1[%c1144, %c0_55] : memref<1768x32xf32, #tpu.memory_space<vmem>>, vector<32x32xf32>
    %cst_56 = arith.constant dense<0.000000e+00> : vector<16x32xf32>
    %140 = tpu.matmul %138, %139, %cst_56 {dimension_numbers = #tpu.dot_dimension_numbers<[1], [0], [0], [1], [0, 0, 1, 1], [], []>} : vector<16x32xf32>, vector<32x32xf32>, vector<16x32xf32> -> vector<16x32xf32>
    %c1176 = arith.constant 1176 : index
    %c0_57 = arith.constant 0 : index
    %141 = vector.load %arg1[%c1176, %c0_57] : memref<1768x32xf32, #tpu.memory_space<vmem>>, vector<1x32xf32>
    %142 = vector.broadcast %141 : vector<1x32xf32> to vector<16x32xf32>
    %143 = arith.addf %140, %142 : vector<16x32xf32>
    %c1184 = arith.constant 1184 : index
    %c0_58 = arith.constant 0 : index
    %144 = vector.load %arg1[%c1184, %c0_58] : memref<1768x32xf32, #tpu.memory_space<vmem>>, vector<32x32xf32>
    %cst_59 = arith.constant dense<0.000000e+00> : vector<16x32xf32>
    %145 = tpu.matmul %138, %144, %cst_59 {dimension_numbers = #tpu.dot_dimension_numbers<[1], [0], [0], [1], [0, 0, 1, 1], [], []>} : vector<16x32xf32>, vector<32x32xf32>, vector<16x32xf32> -> vector<16x32xf32>
    %c1216 = arith.constant 1216 : index
    %c0_60 = arith.constant 0 : index
    %146 = vector.load %arg1[%c1216, %c0_60] : memref<1768x32xf32, #tpu.memory_space<vmem>>, vector<1x32xf32>
    %147 = vector.broadcast %146 : vector<1x32xf32> to vector<16x32xf32>
    %148 = arith.addf %145, %147 : vector<16x32xf32>
    %c1224 = arith.constant 1224 : index
    %c0_61 = arith.constant 0 : index
    %149 = vector.load %arg1[%c1224, %c0_61] : memref<1768x32xf32, #tpu.memory_space<vmem>>, vector<32x32xf32>
    %cst_62 = arith.constant dense<0.000000e+00> : vector<16x32xf32>
    %150 = tpu.matmul %138, %149, %cst_62 {dimension_numbers = #tpu.dot_dimension_numbers<[1], [0], [0], [1], [0, 0, 1, 1], [], []>} : vector<16x32xf32>, vector<32x32xf32>, vector<16x32xf32> -> vector<16x32xf32>
    %c1256 = arith.constant 1256 : index
    %c0_63 = arith.constant 0 : index
    %151 = vector.load %arg1[%c1256, %c0_63] : memref<1768x32xf32, #tpu.memory_space<vmem>>, vector<1x32xf32>
    %152 = vector.broadcast %151 : vector<1x32xf32> to vector<16x32xf32>
    %153 = arith.addf %150, %152 : vector<16x32xf32>
    %154 = tpu.concatenate %148, %148, %148, %148 in 0 : vector<16x32xf32>, vector<16x32xf32>, vector<16x32xf32>, vector<16x32xf32> -> vector<64x32xf32>
    %155 = arith.mulf %154, %5 : vector<64x32xf32>
    %156 = tpu.concatenate %153, %153, %153, %153 in 0 : vector<16x32xf32>, vector<16x32xf32>, vector<16x32xf32>, vector<16x32xf32> -> vector<64x32xf32>
    %157 = arith.mulf %156, %5 : vector<64x32xf32>
    %cst_64 = arith.constant dense<0.000000e+00> : vector<16x64xf32>
    %158 = tpu.matmul %143, %155, %cst_64 {dimension_numbers = #tpu.dot_dimension_numbers<[1], [1], [0], [0], [0, 0, 1, 0], [], []>} : vector<16x32xf32>, vector<64x32xf32>, vector<16x64xf32> -> vector<16x64xf32>
    %159 = arith.addf %158, %6 : vector<16x64xf32>
    %cst_65 = arith.constant dense<0xFF800000> : vector<16xf32>
    %160 = vector.multi_reduction <maximumf>, %159, %cst_65 [1] : vector<16x64xf32> to vector<16xf32>
    %161 = vector.shape_cast %160 : vector<16xf32> to vector<16x1xf32>
    %162 = vector.broadcast %161 : vector<16x1xf32> to vector<16x64xf32>
    %163 = arith.subf %159, %162 : vector<16x64xf32>
    %164 = math.exp %163 : vector<16x64xf32>
    %cst_66 = arith.constant dense<0.000000e+00> : vector<16x64xf32>
    %165 = tpu.matmul %164, %7, %cst_66 {dimension_numbers = #tpu.dot_dimension_numbers<[1], [0], [0], [1], [0, 0, 1, 1], [], []>} : vector<16x64xf32>, vector<64x64xf32>, vector<16x64xf32> -> vector<16x64xf32>
    %166 = arith.divf %164, %165 : vector<16x64xf32>
    %cst_67 = arith.constant dense<0.000000e+00> : vector<16x32xf32>
    %167 = tpu.matmul %166, %157, %cst_67 {dimension_numbers = #tpu.dot_dimension_numbers<[1], [0], [0], [1], [0, 0, 1, 1], [], []>} : vector<16x64xf32>, vector<64x32xf32>, vector<16x32xf32> -> vector<16x32xf32>
    %c1264 = arith.constant 1264 : index
    %c0_68 = arith.constant 0 : index
    %168 = vector.load %arg1[%c1264, %c0_68] : memref<1768x32xf32, #tpu.memory_space<vmem>>, vector<32x32xf32>
    %cst_69 = arith.constant dense<0.000000e+00> : vector<16x32xf32>
    %169 = tpu.matmul %167, %168, %cst_69 {dimension_numbers = #tpu.dot_dimension_numbers<[1], [0], [0], [1], [0, 0, 1, 1], [], []>} : vector<16x32xf32>, vector<32x32xf32>, vector<16x32xf32> -> vector<16x32xf32>
    %c1296 = arith.constant 1296 : index
    %c0_70 = arith.constant 0 : index
    %170 = vector.load %arg1[%c1296, %c0_70] : memref<1768x32xf32, #tpu.memory_space<vmem>>, vector<1x32xf32>
    %171 = vector.broadcast %170 : vector<1x32xf32> to vector<16x32xf32>
    %172 = arith.addf %169, %171 : vector<16x32xf32>
    %173 = arith.addf %114, %172 : vector<16x32xf32>
    %c1304 = arith.constant 1304 : index
    %c0_71 = arith.constant 0 : index
    %174 = vector.load %arg1[%c1304, %c0_71] : memref<1768x32xf32, #tpu.memory_space<vmem>>, vector<1x32xf32>
    %c1312 = arith.constant 1312 : index
    %c0_72 = arith.constant 0 : index
    %175 = vector.load %arg1[%c1312, %c0_72] : memref<1768x32xf32, #tpu.memory_space<vmem>>, vector<1x32xf32>
    %cst_73 = arith.constant dense<0.000000e+00> : vector<16xf32>
    %176 = vector.multi_reduction <add>, %173, %cst_73 [1] : vector<16x32xf32> to vector<16xf32>
    %177 = vector.shape_cast %176 : vector<16xf32> to vector<16x1xf32>
    %cst_74 = arith.constant 3.200000e+01 : f32
    %178 = vector.broadcast %cst_74 : f32 to vector<16x1xf32>
    %179 = arith.divf %177, %178 : vector<16x1xf32>
    %180 = vector.broadcast %179 : vector<16x1xf32> to vector<16x32xf32>
    %181 = arith.subf %173, %180 : vector<16x32xf32>
    %182 = arith.mulf %181, %181 : vector<16x32xf32>
    %cst_75 = arith.constant dense<0.000000e+00> : vector<16xf32>
    %183 = vector.multi_reduction <add>, %182, %cst_75 [1] : vector<16x32xf32> to vector<16xf32>
    %184 = vector.shape_cast %183 : vector<16xf32> to vector<16x1xf32>
    %cst_76 = arith.constant 3.200000e+01 : f32
    %185 = vector.broadcast %cst_76 : f32 to vector<16x1xf32>
    %186 = arith.divf %184, %185 : vector<16x1xf32>
    %187 = vector.broadcast %179 : vector<16x1xf32> to vector<16x32xf32>
    %188 = arith.subf %173, %187 : vector<16x32xf32>
    %cst_77 = arith.constant 9.99999974E-6 : f32
    %189 = vector.broadcast %cst_77 : f32 to vector<16x1xf32>
    %190 = arith.addf %186, %189 : vector<16x1xf32>
    %191 = math.rsqrt %190 : vector<16x1xf32>
    %192 = vector.broadcast %191 : vector<16x1xf32> to vector<16x32xf32>
    %193 = arith.mulf %188, %192 : vector<16x32xf32>
    %194 = vector.broadcast %174 : vector<1x32xf32> to vector<16x32xf32>
    %195 = arith.mulf %193, %194 : vector<16x32xf32>
    %196 = vector.broadcast %175 : vector<1x32xf32> to vector<16x32xf32>
    %197 = arith.addf %195, %196 : vector<16x32xf32>
    %c40 = arith.constant 40 : index
    %c0_78 = arith.constant 0 : index
    %198 = vector.load %arg2[%c40, %c0_78] : memref<160x128xf32, #tpu.memory_space<vmem>>, vector<32x128xf32>
    %cst_79 = arith.constant dense<0.000000e+00> : vector<16x128xf32>
    %199 = tpu.matmul %197, %198, %cst_79 {dimension_numbers = #tpu.dot_dimension_numbers<[1], [0], [0], [1], [0, 0, 1, 1], [], []>} : vector<16x32xf32>, vector<32x128xf32>, vector<16x128xf32> -> vector<16x128xf32>
    %c72 = arith.constant 72 : index
    %c0_80 = arith.constant 0 : index
    %200 = vector.load %arg2[%c72, %c0_80] : memref<160x128xf32, #tpu.memory_space<vmem>>, vector<1x128xf32>
    %201 = vector.broadcast %200 : vector<1x128xf32> to vector<16x128xf32>
    %202 = arith.addf %199, %201 : vector<16x128xf32>
    %203 = arith.mulf %202, %202 : vector<16x128xf32>
    %204 = arith.mulf %202, %203 : vector<16x128xf32>
    %cst_81 = arith.constant 4.471500e-02 : f32
    %205 = vector.broadcast %cst_81 : f32 to vector<16x128xf32>
    %206 = arith.mulf %205, %204 : vector<16x128xf32>
    %207 = arith.addf %202, %206 : vector<16x128xf32>
    %cst_82 = arith.constant 0.797884583 : f32
    %208 = vector.broadcast %cst_82 : f32 to vector<16x128xf32>
    %209 = arith.mulf %208, %207 : vector<16x128xf32>
    %210 = math.tanh %209 : vector<16x128xf32>
    %cst_83 = arith.constant 1.000000e+00 : f32
    %211 = vector.broadcast %cst_83 : f32 to vector<16x128xf32>
    %212 = arith.addf %211, %210 : vector<16x128xf32>
    %cst_84 = arith.constant 5.000000e-01 : f32
    %213 = vector.broadcast %cst_84 : f32 to vector<16x128xf32>
    %214 = arith.mulf %213, %212 : vector<16x128xf32>
    %215 = arith.mulf %202, %214 : vector<16x128xf32>
    %c1320 = arith.constant 1320 : index
    %c0_85 = arith.constant 0 : index
    %216 = vector.load %arg1[%c1320, %c0_85] : memref<1768x32xf32, #tpu.memory_space<vmem>>, vector<128x32xf32>
    %cst_86 = arith.constant dense<0.000000e+00> : vector<16x32xf32>
    %217 = tpu.matmul %215, %216, %cst_86 {dimension_numbers = #tpu.dot_dimension_numbers<[1], [0], [0], [1], [0, 0, 1, 1], [], []>} : vector<16x128xf32>, vector<128x32xf32>, vector<16x32xf32> -> vector<16x32xf32>
    %218 = arith.addf %173, %217 : vector<16x32xf32>
    %c1448 = arith.constant 1448 : index
    %c0_87 = arith.constant 0 : index
    %219 = vector.load %arg1[%c1448, %c0_87] : memref<1768x32xf32, #tpu.memory_space<vmem>>, vector<1x32xf32>
    %220 = vector.broadcast %219 : vector<1x32xf32> to vector<16x32xf32>
    %221 = arith.addf %218, %220 : vector<16x32xf32>
    %c784 = arith.constant 784 : index
    %c0_88 = arith.constant 0 : index
    %222 = vector.load %arg1[%c784, %c0_88] : memref<1768x32xf32, #tpu.memory_space<vmem>>, vector<1x32xf32>
    %c792 = arith.constant 792 : index
    %c0_89 = arith.constant 0 : index
    %223 = vector.load %arg1[%c792, %c0_89] : memref<1768x32xf32, #tpu.memory_space<vmem>>, vector<1x32xf32>
    %cst_90 = arith.constant dense<0.000000e+00> : vector<16xf32>
    %224 = vector.multi_reduction <add>, %221, %cst_90 [1] : vector<16x32xf32> to vector<16xf32>
    %225 = vector.shape_cast %224 : vector<16xf32> to vector<16x1xf32>
    %cst_91 = arith.constant 3.200000e+01 : f32
    %226 = vector.broadcast %cst_91 : f32 to vector<16x1xf32>
    %227 = arith.divf %225, %226 : vector<16x1xf32>
    %228 = vector.broadcast %227 : vector<16x1xf32> to vector<16x32xf32>
    %229 = arith.subf %221, %228 : vector<16x32xf32>
    %230 = arith.mulf %229, %229 : vector<16x32xf32>
    %cst_92 = arith.constant dense<0.000000e+00> : vector<16xf32>
    %231 = vector.multi_reduction <add>, %230, %cst_92 [1] : vector<16x32xf32> to vector<16xf32>
    %232 = vector.shape_cast %231 : vector<16xf32> to vector<16x1xf32>
    %cst_93 = arith.constant 3.200000e+01 : f32
    %233 = vector.broadcast %cst_93 : f32 to vector<16x1xf32>
    %234 = arith.divf %232, %233 : vector<16x1xf32>
    %235 = vector.broadcast %227 : vector<16x1xf32> to vector<16x32xf32>
    %236 = arith.subf %221, %235 : vector<16x32xf32>
    %cst_94 = arith.constant 9.99999974E-6 : f32
    %237 = vector.broadcast %cst_94 : f32 to vector<16x1xf32>
    %238 = arith.addf %234, %237 : vector<16x1xf32>
    %239 = math.rsqrt %238 : vector<16x1xf32>
    %240 = vector.broadcast %239 : vector<16x1xf32> to vector<16x32xf32>
    %241 = arith.mulf %236, %240 : vector<16x32xf32>
    %242 = vector.broadcast %222 : vector<1x32xf32> to vector<16x32xf32>
    %243 = arith.mulf %241, %242 : vector<16x32xf32>
    %244 = vector.broadcast %223 : vector<1x32xf32> to vector<16x32xf32>
    %245 = arith.addf %243, %244 : vector<16x32xf32>
    %c1752 = arith.constant 1752 : index
    %c0_95 = arith.constant 0 : index
    %246 = vector.load %arg1[%c1752, %c0_95] : memref<1768x32xf32, #tpu.memory_space<vmem>>, vector<2x16xf32>
    %cst_96 = arith.constant dense<0.000000e+00> : vector<2x32xf32>
    %247 = tpu.matmul %246, %245, %cst_96 {dimension_numbers = #tpu.dot_dimension_numbers<[1], [0], [0], [1], [0, 0, 1, 1], [], []>} : vector<2x16xf32>, vector<16x32xf32>, vector<2x32xf32> -> vector<2x32xf32>
    %c1456 = arith.constant 1456 : index
    %c0_97 = arith.constant 0 : index
    %248 = vector.load %arg1[%c1456, %c0_97] : memref<1768x32xf32, #tpu.memory_space<vmem>>, vector<1x32xf32>
    %c1464 = arith.constant 1464 : index
    %c0_98 = arith.constant 0 : index
    %249 = vector.load %arg1[%c1464, %c0_98] : memref<1768x32xf32, #tpu.memory_space<vmem>>, vector<1x32xf32>
    %cst_99 = arith.constant dense<0.000000e+00> : vector<2xf32>
    %250 = vector.multi_reduction <add>, %247, %cst_99 [1] : vector<2x32xf32> to vector<2xf32>
    %251 = vector.shape_cast %250 : vector<2xf32> to vector<2x1xf32>
    %cst_100 = arith.constant 3.200000e+01 : f32
    %252 = vector.broadcast %cst_100 : f32 to vector<2x1xf32>
    %253 = arith.divf %251, %252 : vector<2x1xf32>
    %254 = vector.broadcast %253 : vector<2x1xf32> to vector<2x32xf32>
    %255 = arith.subf %247, %254 : vector<2x32xf32>
    %256 = arith.mulf %255, %255 : vector<2x32xf32>
    %cst_101 = arith.constant dense<0.000000e+00> : vector<2xf32>
    %257 = vector.multi_reduction <add>, %256, %cst_101 [1] : vector<2x32xf32> to vector<2xf32>
    %258 = vector.shape_cast %257 : vector<2xf32> to vector<2x1xf32>
    %cst_102 = arith.constant 3.200000e+01 : f32
    %259 = vector.broadcast %cst_102 : f32 to vector<2x1xf32>
    %260 = arith.divf %258, %259 : vector<2x1xf32>
    %261 = vector.broadcast %253 : vector<2x1xf32> to vector<2x32xf32>
    %262 = arith.subf %247, %261 : vector<2x32xf32>
    %cst_103 = arith.constant 9.99999974E-6 : f32
    %263 = vector.broadcast %cst_103 : f32 to vector<2x1xf32>
    %264 = arith.addf %260, %263 : vector<2x1xf32>
    %265 = math.rsqrt %264 : vector<2x1xf32>
    %266 = vector.broadcast %265 : vector<2x1xf32> to vector<2x32xf32>
    %267 = arith.mulf %262, %266 : vector<2x32xf32>
    %268 = vector.broadcast %248 : vector<1x32xf32> to vector<2x32xf32>
    %269 = arith.mulf %267, %268 : vector<2x32xf32>
    %270 = vector.broadcast %249 : vector<1x32xf32> to vector<2x32xf32>
    %271 = arith.addf %269, %270 : vector<2x32xf32>
    %c1472 = arith.constant 1472 : index
    %c0_104 = arith.constant 0 : index
    %272 = vector.load %arg1[%c1472, %c0_104] : memref<1768x32xf32, #tpu.memory_space<vmem>>, vector<32x16xf32>
    %cst_105 = arith.constant dense<0.000000e+00> : vector<2x16xf32>
    %273 = tpu.matmul %271, %272, %cst_105 {dimension_numbers = #tpu.dot_dimension_numbers<[1], [0], [0], [1], [0, 0, 1, 1], [], []>} : vector<2x32xf32>, vector<32x16xf32>, vector<2x16xf32> -> vector<2x16xf32>
    %c1504 = arith.constant 1504 : index
    %c0_106 = arith.constant 0 : index
    %274 = vector.load %arg1[%c1504, %c0_106] : memref<1768x32xf32, #tpu.memory_space<vmem>>, vector<1x16xf32>
    %275 = vector.broadcast %274 : vector<1x16xf32> to vector<2x16xf32>
    %276 = arith.addf %273, %275 : vector<2x16xf32>
    %277 = arith.mulf %276, %276 : vector<2x16xf32>
    %278 = arith.mulf %276, %277 : vector<2x16xf32>
    %cst_107 = arith.constant 4.471500e-02 : f32
    %279 = vector.broadcast %cst_107 : f32 to vector<2x16xf32>
    %280 = arith.mulf %279, %278 : vector<2x16xf32>
    %281 = arith.addf %276, %280 : vector<2x16xf32>
    %cst_108 = arith.constant 0.797884583 : f32
    %282 = vector.broadcast %cst_108 : f32 to vector<2x16xf32>
    %283 = arith.mulf %282, %281 : vector<2x16xf32>
    %284 = math.tanh %283 : vector<2x16xf32>
    %cst_109 = arith.constant 1.000000e+00 : f32
    %285 = vector.broadcast %cst_109 : f32 to vector<2x16xf32>
    %286 = arith.addf %285, %284 : vector<2x16xf32>
    %cst_110 = arith.constant 5.000000e-01 : f32
    %287 = vector.broadcast %cst_110 : f32 to vector<2x16xf32>
    %288 = arith.mulf %287, %286 : vector<2x16xf32>
    %289 = arith.mulf %276, %288 : vector<2x16xf32>
    %c1512 = arith.constant 1512 : index
    %c0_111 = arith.constant 0 : index
    %290 = vector.load %arg1[%c1512, %c0_111] : memref<1768x32xf32, #tpu.memory_space<vmem>>, vector<16x32xf32>
    %cst_112 = arith.constant dense<0.000000e+00> : vector<2x32xf32>
    %291 = tpu.matmul %289, %290, %cst_112 {dimension_numbers = #tpu.dot_dimension_numbers<[1], [0], [0], [1], [0, 0, 1, 1], [], []>} : vector<2x16xf32>, vector<16x32xf32>, vector<2x32xf32> -> vector<2x32xf32>
    %292 = arith.addf %247, %291 : vector<2x32xf32>
    %c1528 = arith.constant 1528 : index
    %c0_113 = arith.constant 0 : index
    %293 = vector.load %arg1[%c1528, %c0_113] : memref<1768x32xf32, #tpu.memory_space<vmem>>, vector<1x32xf32>
    %294 = vector.broadcast %293 : vector<1x32xf32> to vector<2x32xf32>
    %295 = arith.addf %292, %294 : vector<2x32xf32>
    %c1616 = arith.constant 1616 : index
    %c0_114 = arith.constant 0 : index
    %296 = vector.load %arg1[%c1616, %c0_114] : memref<1768x32xf32, #tpu.memory_space<vmem>>, vector<16x32xf32>
    %297 = arith.addf %245, %296 : vector<16x32xf32>
    %c1536 = arith.constant 1536 : index
    %c0_115 = arith.constant 0 : index
    %298 = vector.load %arg1[%c1536, %c0_115] : memref<1768x32xf32, #tpu.memory_space<vmem>>, vector<1x32xf32>
    %c1544 = arith.constant 1544 : index
    %c0_116 = arith.constant 0 : index
    %299 = vector.load %arg1[%c1544, %c0_116] : memref<1768x32xf32, #tpu.memory_space<vmem>>, vector<1x32xf32>
    %cst_117 = arith.constant dense<0.000000e+00> : vector<16xf32>
    %300 = vector.multi_reduction <add>, %297, %cst_117 [1] : vector<16x32xf32> to vector<16xf32>
    %301 = vector.shape_cast %300 : vector<16xf32> to vector<16x1xf32>
    %cst_118 = arith.constant 3.200000e+01 : f32
    %302 = vector.broadcast %cst_118 : f32 to vector<16x1xf32>
    %303 = arith.divf %301, %302 : vector<16x1xf32>
    %304 = vector.broadcast %303 : vector<16x1xf32> to vector<16x32xf32>
    %305 = arith.subf %297, %304 : vector<16x32xf32>
    %306 = arith.mulf %305, %305 : vector<16x32xf32>
    %cst_119 = arith.constant dense<0.000000e+00> : vector<16xf32>
    %307 = vector.multi_reduction <add>, %306, %cst_119 [1] : vector<16x32xf32> to vector<16xf32>
    %308 = vector.shape_cast %307 : vector<16xf32> to vector<16x1xf32>
    %cst_120 = arith.constant 3.200000e+01 : f32
    %309 = vector.broadcast %cst_120 : f32 to vector<16x1xf32>
    %310 = arith.divf %308, %309 : vector<16x1xf32>
    %311 = vector.broadcast %303 : vector<16x1xf32> to vector<16x32xf32>
    %312 = arith.subf %297, %311 : vector<16x32xf32>
    %cst_121 = arith.constant 9.99999974E-6 : f32
    %313 = vector.broadcast %cst_121 : f32 to vector<16x1xf32>
    %314 = arith.addf %310, %313 : vector<16x1xf32>
    %315 = math.rsqrt %314 : vector<16x1xf32>
    %316 = vector.broadcast %315 : vector<16x1xf32> to vector<16x32xf32>
    %317 = arith.mulf %312, %316 : vector<16x32xf32>
    %318 = vector.broadcast %298 : vector<1x32xf32> to vector<16x32xf32>
    %319 = arith.mulf %317, %318 : vector<16x32xf32>
    %320 = vector.broadcast %299 : vector<1x32xf32> to vector<16x32xf32>
    %321 = arith.addf %319, %320 : vector<16x32xf32>
    %c1552 = arith.constant 1552 : index
    %c0_122 = arith.constant 0 : index
    %322 = vector.load %arg1[%c1552, %c0_122] : memref<1768x32xf32, #tpu.memory_space<vmem>>, vector<32x16xf32>
    %cst_123 = arith.constant dense<0.000000e+00> : vector<16x16xf32>
    %323 = tpu.matmul %321, %322, %cst_123 {dimension_numbers = #tpu.dot_dimension_numbers<[1], [0], [0], [1], [0, 0, 1, 1], [], []>} : vector<16x32xf32>, vector<32x16xf32>, vector<16x16xf32> -> vector<16x16xf32>
    %c1584 = arith.constant 1584 : index
    %c0_124 = arith.constant 0 : index
    %324 = vector.load %arg1[%c1584, %c0_124] : memref<1768x32xf32, #tpu.memory_space<vmem>>, vector<1x16xf32>
    %325 = vector.broadcast %324 : vector<1x16xf32> to vector<16x16xf32>
    %326 = arith.addf %323, %325 : vector<16x16xf32>
    %327 = arith.mulf %326, %326 : vector<16x16xf32>
    %328 = arith.mulf %326, %327 : vector<16x16xf32>
    %cst_125 = arith.constant 4.471500e-02 : f32
    %329 = vector.broadcast %cst_125 : f32 to vector<16x16xf32>
    %330 = arith.mulf %329, %328 : vector<16x16xf32>
    %331 = arith.addf %326, %330 : vector<16x16xf32>
    %cst_126 = arith.constant 0.797884583 : f32
    %332 = vector.broadcast %cst_126 : f32 to vector<16x16xf32>
    %333 = arith.mulf %332, %331 : vector<16x16xf32>
    %334 = math.tanh %333 : vector<16x16xf32>
    %cst_127 = arith.constant 1.000000e+00 : f32
    %335 = vector.broadcast %cst_127 : f32 to vector<16x16xf32>
    %336 = arith.addf %335, %334 : vector<16x16xf32>
    %cst_128 = arith.constant 5.000000e-01 : f32
    %337 = vector.broadcast %cst_128 : f32 to vector<16x16xf32>
    %338 = arith.mulf %337, %336 : vector<16x16xf32>
    %339 = arith.mulf %326, %338 : vector<16x16xf32>
    %c1592 = arith.constant 1592 : index
    %c0_129 = arith.constant 0 : index
    %340 = vector.load %arg1[%c1592, %c0_129] : memref<1768x32xf32, #tpu.memory_space<vmem>>, vector<16x32xf32>
    %cst_130 = arith.constant dense<0.000000e+00> : vector<16x32xf32>
    %341 = tpu.matmul %339, %340, %cst_130 {dimension_numbers = #tpu.dot_dimension_numbers<[1], [0], [0], [1], [0, 0, 1, 1], [], []>} : vector<16x16xf32>, vector<16x32xf32>, vector<16x32xf32> -> vector<16x32xf32>
    %342 = arith.addf %297, %341 : vector<16x32xf32>
    %c1608 = arith.constant 1608 : index
    %c0_131 = arith.constant 0 : index
    %343 = vector.load %arg1[%c1608, %c0_131] : memref<1768x32xf32, #tpu.memory_space<vmem>>, vector<1x32xf32>
    %344 = vector.broadcast %343 : vector<1x32xf32> to vector<16x32xf32>
    %345 = arith.addf %342, %344 : vector<16x32xf32>
    %c1760 = arith.constant 1760 : index
    %c0_132 = arith.constant 0 : index
    %346 = vector.load %arg1[%c1760, %c0_132] : memref<1768x32xf32, #tpu.memory_space<vmem>>, vector<2x16xf32>
    %cst_133 = arith.constant dense<0.000000e+00> : vector<2x32xf32>
    %347 = tpu.matmul %346, %345, %cst_133 {dimension_numbers = #tpu.dot_dimension_numbers<[1], [0], [0], [1], [0, 0, 1, 1], [], []>} : vector<2x16xf32>, vector<16x32xf32>, vector<2x32xf32> -> vector<2x32xf32>
    %348 = arith.addf %295, %347 : vector<2x32xf32>
    %c1632 = arith.constant 1632 : index
    %c0_134 = arith.constant 0 : index
    %349 = vector.load %arg1[%c1632, %c0_134] : memref<1768x32xf32, #tpu.memory_space<vmem>>, vector<1x32xf32>
    %c1640 = arith.constant 1640 : index
    %c0_135 = arith.constant 0 : index
    %350 = vector.load %arg1[%c1640, %c0_135] : memref<1768x32xf32, #tpu.memory_space<vmem>>, vector<1x32xf32>
    %cst_136 = arith.constant dense<0.000000e+00> : vector<2xf32>
    %351 = vector.multi_reduction <add>, %348, %cst_136 [1] : vector<2x32xf32> to vector<2xf32>
    %352 = vector.shape_cast %351 : vector<2xf32> to vector<2x1xf32>
    %cst_137 = arith.constant 3.200000e+01 : f32
    %353 = vector.broadcast %cst_137 : f32 to vector<2x1xf32>
    %354 = arith.divf %352, %353 : vector<2x1xf32>
    %355 = vector.broadcast %354 : vector<2x1xf32> to vector<2x32xf32>
    %356 = arith.subf %348, %355 : vector<2x32xf32>
    %357 = arith.mulf %356, %356 : vector<2x32xf32>
    %cst_138 = arith.constant dense<0.000000e+00> : vector<2xf32>
    %358 = vector.multi_reduction <add>, %357, %cst_138 [1] : vector<2x32xf32> to vector<2xf32>
    %359 = vector.shape_cast %358 : vector<2xf32> to vector<2x1xf32>
    %cst_139 = arith.constant 3.200000e+01 : f32
    %360 = vector.broadcast %cst_139 : f32 to vector<2x1xf32>
    %361 = arith.divf %359, %360 : vector<2x1xf32>
    %362 = vector.broadcast %354 : vector<2x1xf32> to vector<2x32xf32>
    %363 = arith.subf %348, %362 : vector<2x32xf32>
    %cst_140 = arith.constant 9.99999974E-6 : f32
    %364 = vector.broadcast %cst_140 : f32 to vector<2x1xf32>
    %365 = arith.addf %361, %364 : vector<2x1xf32>
    %366 = math.rsqrt %365 : vector<2x1xf32>
    %367 = vector.broadcast %366 : vector<2x1xf32> to vector<2x32xf32>
    %368 = arith.mulf %363, %367 : vector<2x32xf32>
    %369 = vector.broadcast %349 : vector<1x32xf32> to vector<2x32xf32>
    %370 = arith.mulf %368, %369 : vector<2x32xf32>
    %371 = vector.broadcast %350 : vector<1x32xf32> to vector<2x32xf32>
    %372 = arith.addf %370, %371 : vector<2x32xf32>
    %c1648 = arith.constant 1648 : index
    %c0_141 = arith.constant 0 : index
    %373 = vector.load %arg1[%c1648, %c0_141] : memref<1768x32xf32, #tpu.memory_space<vmem>>, vector<32x2xf32>
    %cst_142 = arith.constant dense<0.000000e+00> : vector<2x2xf32>
    %374 = tpu.matmul %372, %373, %cst_142 {dimension_numbers = #tpu.dot_dimension_numbers<[1], [0], [0], [1], [0, 0, 1, 1], [], []>} : vector<2x32xf32>, vector<32x2xf32>, vector<2x2xf32> -> vector<2x2xf32>
    %c1680 = arith.constant 1680 : index
    %c0_143 = arith.constant 0 : index
    %375 = vector.load %arg1[%c1680, %c0_143] : memref<1768x32xf32, #tpu.memory_space<vmem>>, vector<1x2xf32>
    %376 = vector.broadcast %375 : vector<1x2xf32> to vector<2x2xf32>
    %377 = arith.addf %374, %376 : vector<2x2xf32>
    %c0_144 = arith.constant 0 : index
    %c0_145 = arith.constant 0 : index
    %378 = vector.load %arg3[%c0_144, %c0_145] : memref<2x2xf32, #tpu.memory_space<vmem>>, vector<2x2xf32>
    tpu.vector_store %arg3[%c0_144, %c0_145], %377 {strides = array<i32>} : memref<2x2xf32, #tpu.memory_space<vmem>>, vector<2x2xf32>,
    return
  }
}

</mosaic_0001>

<bundles_post_ra>
// kernel: forward.1
= control target key start
LH: loop header
LB: loop body
LE: loop exit
PB: predicated region body
PF: predicated region fallthrough
CT: control target
= control target key end

     0   :  { %s4912_s0 = inlined_call_operand.vmem [shape: f32[16,768], index: 0, kind: input, shape index: {}]   ;;  %s4913_s1 = inlined_call_operand.vmem [shape: f32[1768,32], index: 1, kind: input, shape index: {}]   ;;  %s4914_s2 = inlined_call_operand.vmem [shape: f32[160,128], index: 2, kind: input, shape index: {}]   ;;  %s4915_s3 = inlined_call_operand.hbm [shape: f32[2,2], index: 3, kind: output, shape index: {}]  }
   0x1   :  { %v58_v0 = vld [vmem:[%s4913_s1 + $0xf8] sm:$0xff]  ;;  %v57_v2 = vld [vmem:[%s4913_s1 + $0xf0] sm:$0xff]  ;;  %v56_v6 = vld [vmem:[%s4913_s1 + $0xe8] sm:$0xff] }
   0x2   :  { %v42_v1 = vld [vmem:[%s4913_s1 + $0x78] sm:$0xff]  ;;  %3091 = vmatprep.subr.mxu0 %v58_v0  ;;  %v41_v4 = vld [vmem:[%s4913_s1 + $0x70] sm:$0xff]  ;;  %v40_v8 = vld [vmem:[%s4913_s1 + $0x68] sm:$0xff] }
   0x3   :  { %v90_v3 = vld [vmem:[%s4913_s1 + $0x1f8] sm:$0xff]  ;;  %3092 = vmatpush3.msra.mxu0 %v42_v1  ;;  %v89_v7 = vld [vmem:[%s4913_s1 + $0x1f0] sm:$0xff]  ;;  %v88_v10 = vld [vmem:[%s4913_s1 + $0x1e8] sm:$0xff] }
   0x4   :  { %v74_v5 = vld [vmem:[%s4913_s1 + $0x178] sm:$0xff]  ;;  %3129 = vmatprep.subr.mxu1 %v90_v3  ;;  %3093 = vmatprep.subr.mxu0 %v57_v2  ;;  %v73_v9 = vld [vmem:[%s4913_s1 + $0x170] sm:$0xff]  ;;  %v55_v11 = vld [vmem:[%s4913_s1 + $0xe0] sm:$0xff] }
   0x5   :  { %3130 = vmatpush3.msra.mxu1 %v74_v5  ;;  %3094 = vmatpush3.msra.mxu0 %v41_v4  ;;  %v72_v12 = vld [vmem:[%s4913_s1 + $0x168] sm:$0xff]  ;;  %v39_v13 = vld [vmem:[%s4913_s1 + $0x60] sm:$0xff]  ;;  %v54_v15 = vld [vmem:[%s4913_s1 + $0xd8] sm:$0xff] }
   0x6   :  { %3131 = vmatprep.subr.mxu1 %v89_v7  ;;  %3095 = vmatprep.subr.mxu0 %v56_v6  ;;  %v87_v14 = vld [vmem:[%s4913_s1 + $0x1e0] sm:$0xff]  ;;  %v38_v17 = vld [vmem:[%s4913_s1 + $0x58] sm:$0xff]  ;;  %v53_v19 = vld [vmem:[%s4913_s1 + $0xd0] sm:$0xff] }
   0x7   :  { %3132 = vmatpush3.msra.mxu1 %v73_v9  ;;  %3096 = vmatpush3.msra.mxu0 %v40_v8  ;;  %v71_v16 = vld [vmem:[%s4913_s1 + $0x160] sm:$0xff]  ;;  %v86_v18 = vld [vmem:[%s4913_s1 + $0x1d8] sm:$0xff]  ;;  %v37_v21 = vld [vmem:[%s4913_s1 + $0x50] sm:$0xff] }
   0x8   :  { %3133 = vmatprep.subr.mxu1 %v88_v10  ;;  %3097 = vmatprep.subr.mxu0 %v55_v11  ;;  %v70_v20 = vld [vmem:[%s4913_s1 + $0x158] sm:$0xff]  ;;  %v85_v22 = vld [vmem:[%s4913_s1 + $0x1d0] sm:$0xff]  ;;  %v52_v23 = vld [vmem:[%s4913_s1 + $0xc8] sm:$0xff] }
   0x9   :  { %3134 = vmatpush3.msra.mxu1 %v72_v12  ;;  %3098 = vmatpush3.msra.mxu0 %v39_v13  ;;  %v69_v24 = vld [vmem:[%s4913_s1 + $0x150] sm:$0xff]  ;;  %v36_v25 = vld [vmem:[%s4913_s1 + $0x48] sm:$0xff]  ;;  %v51_v27 = vld [vmem:[%s4913_s1 + $0xc0] sm:$0xff] }
   0xa   :  { %3135 = vmatprep.subr.mxu1 %v87_v14  ;;  %3099 = vmatprep.subr.mxu0 %v54_v15  ;;  %v84_v26 = vld [vmem:[%s4913_s1 + $0x1c8] sm:$0xff]  ;;  %v35_v29 = vld [vmem:[%s4913_s1 + $0x40] sm:$0xff]  ;;  %v50_v31 = vld [vmem:[%s4913_s1 + $0xb8] sm:$0xff] }
   0xb   :  { %3136 = vmatpush3.msra.mxu1 %v71_v16  ;;  %3100 = vmatpush3.msra.mxu0 %v38_v17  ;;  %v68_v28 = vld [vmem:[%s4913_s1 + $0x148] sm:$0xff]  ;;  %v83_v30 = vld [vmem:[%s4913_s1 + $0x1c0] sm:$0xff]  ;;  %v34_v33 = vld [vmem:[%s4913_s1 + $0x38] sm:$0xff] }
   0xc   :  { %3137 = vmatprep.subr.mxu1 %v86_v18  ;;  %3101 = vmatprep.subr.mxu0 %v53_v19  ;;  %v67_v32 = vld [vmem:[%s4913_s1 + $0x140] sm:$0xff]  ;;  %v82_v34 = vld [vmem:[%s4913_s1 + $0x1b8] sm:$0xff]  ;;  %v49_v35 = vld [vmem:[%s4913_s1 + $0xb0] sm:$0xff] }
   0xd   :  { %3138 = vmatpush3.msra.mxu1 %v70_v20  ;;  %3102 = vmatpush3.msra.mxu0 %v37_v21  ;;  %v66_v36 = vld [vmem:[%s4913_s1 + $0x138] sm:$0xff]  ;;  %v33_v37 = vld [vmem:[%s4913_s1 + $0x30] sm:$0xff]  ;;  %v48_v39 = vld [vmem:[%s4913_s1 + $0xa8] sm:$0xff] }
   0xe   :  { %3139 = vmatprep.subr.mxu1 %v85_v22  ;;  %3103 = vmatprep.subr.mxu0 %v52_v23  ;;  %v81_v38 = vld [vmem:[%s4913_s1 + $0x1b0] sm:$0xff]  ;;  %v32_v41 = vld [vmem:[%s4913_s1 + $0x28] sm:$0xff]  ;;  %v47_v43 = vld [vmem:[%s4913_s1 + $0xa0] sm:$0xff] }
   0xf   :  { %3140 = vmatpush3.msra.mxu1 %v69_v24  ;;  %3104 = vmatpush3.msra.mxu0 %v36_v25  ;;  %v65_v40 = vld [vmem:[%s4913_s1 + $0x130] sm:$0xff]  ;;  %v80_v42 = vld [vmem:[%s4913_s1 + $0x1a8] sm:$0xff]  ;;  %v31_v45 = vld [vmem:[%s4913_s1 + $0x20] sm:$0xff] }
  0x10   :  { %3141 = vmatprep.subr.mxu1 %v84_v26  ;;  %3105 = vmatprep.subr.mxu0 %v51_v27  ;;  %v64_v44 = vld [vmem:[%s4913_s1 + $0x128] sm:$0xff]  ;;  %v79_v46 = vld [vmem:[%s4913_s1 + $0x1a0] sm:$0xff]  ;;  %v46_v47 = vld [vmem:[%s4913_s1 + $0x98] sm:$0xff] }
  0x11   :  { %3142 = vmatpush3.msra.mxu1 %v68_v28  ;;  %3106 = vmatpush3.msra.mxu0 %v35_v29  ;;  %v63_v48 = vld [vmem:[%s4913_s1 + $0x120] sm:$0xff]  ;;  %v30_v49 = vld [vmem:[%s4913_s1 + $0x18] sm:$0xff]  ;;  %v45_v51 = vld [vmem:[%s4913_s1 + $0x90] sm:$0xff] }
  0x12   :  { %3143 = vmatprep.subr.mxu1 %v83_v30  ;;  %3107 = vmatprep.subr.mxu0 %v50_v31  ;;  %v78_v50 = vld [vmem:[%s4913_s1 + $0x198] sm:$0xff]  ;;  %v29_v53 = vld [vmem:[%s4913_s1 + $0x10] sm:$0xff]  ;;  %v44_v55 = vld [vmem:[%s4913_s1 + $0x88] sm:$0xff] }
  0x13   :  { %3144 = vmatpush3.msra.mxu1 %v67_v32  ;;  %3108 = vmatpush3.msra.mxu0 %v34_v33  ;;  %v62_v52 = vld [vmem:[%s4913_s1 + $0x118] sm:$0xff]  ;;  %v77_v54 = vld [vmem:[%s4913_s1 + $0x190] sm:$0xff]  ;;  %v28_v57 = vld [vmem:[%s4913_s1 + $0x8] sm:$0xff] }
  0x14   :  { %3145 = vmatprep.subr.mxu1 %v82_v34  ;;  %3109 = vmatprep.subr.mxu0 %v49_v35  ;;  %v61_v56 = vld [vmem:[%s4913_s1 + $0x110] sm:$0xff]  ;;  %v76_v58 = vld [vmem:[%s4913_s1 + $0x188] sm:$0xff]  ;;  %v43_v59 = vld [vmem:[%s4913_s1 + $0x80] sm:$0xff] }
  0x15   :  { %3146 = vmatpush3.msra.mxu1 %v66_v36  ;;  %3110 = vmatpush3.msra.mxu0 %v33_v37  ;;  %v16_v60 = vld [vmem:[%s4912_s0 + $0x8] sm:$0xff]  ;;  %v27_v61 = vld [vmem:[%s4913_s1] sm:$0xff]  ;;  %v122_v1 = vld [vmem:[%s4913_s1 + $0x2f8] sm:$0xff] }
  0x16   :  { %3147 = vmatprep.subr.mxu1 %v81_v38  ;;  %3111 = vmatprep.subr.mxu0 %v48_v39  ;;  %v60_v62 = vld [vmem:[%s4913_s1 + $0x108] sm:$0xff]  ;;  %v15_v63 = vld [vmem:[%s4912_s0] sm:$0xff]  ;;  %v18_v3 = vld [vmem:[%s4912_s0 + $0x18] sm:$0xff] }
  0x17   :  { %3148 = vmatpush3.msra.mxu1 %v65_v40  ;;  %3112 = vmatpush3.msra.mxu0 %v32_v41  ;;  %v75_v0 = vld [vmem:[%s4913_s1 + $0x180] sm:$0xff]  ;;  %v106_v4 = vld [vmem:[%s4913_s1 + $0x278] sm:$0xff]  ;;  %v17_v5 = vld [vmem:[%s4912_s0 + $0x10] sm:$0xff] }
  0x18   :  { %3149 = vmatprep.subr.mxu1 %v80_v42  ;;  %3113 = vmatprep.subr.mxu0 %v47_v43  ;;  %v59_v2 = vld [vmem:[%s4913_s1 + $0x100] sm:$0xff]  ;;  %v121_v6 = vld [vmem:[%s4913_s1 + $0x2f0] sm:$0xff]  ;;  %v22_v8 = vld [vmem:[%s4912_s0 + $0x38] sm:$0xff] }
  0x19   :  { %3150 = vmatpush3.msra.mxu1 %v64_v44  ;;  %3114 = vmatpush3.msra.mxu0 %v31_v45  ;;  %v105_v7 = vld [vmem:[%s4913_s1 + $0x270] sm:$0xff]  ;;  %v120_v9 = vld [vmem:[%s4913_s1 + $0x2e8] sm:$0xff] }
  0x1a   :  { %3151 = vmatprep.subr.mxu1 %v79_v46  ;;  %3115 = vmatprep.subr.mxu0 %v46_v47  ;;  %v21_v10 = vld [vmem:[%s4912_s0 + $0x30] sm:$0xff]  ;;  %v104_v11 = vld [vmem:[%s4913_s1 + $0x268] sm:$0xff] }
  0x1b   :  { %3152 = vmatpush3.msra.mxu1 %v63_v48  ;;  %3116 = vmatpush3.msra.mxu0 %v30_v49  ;;  %v24_v12 = vld [vmem:[%s4912_s0 + $0x48] sm:$0xff] }
  0x1c   :  { %3153 = vmatprep.subr.mxu1 %v78_v50  ;;  %3117 = vmatprep.subr.mxu0 %v45_v51 }
  0x1d   :  { %3154 = vmatpush3.msra.mxu1 %v62_v52  ;;  %3118 = vmatpush3.msra.mxu0 %v29_v53 }
  0x1e   :  { %3155 = vmatprep.subr.mxu1 %v77_v54  ;;  %3119 = vmatprep.subr.mxu0 %v44_v55 }
  0x1f   :  { %3156 = vmatpush3.msra.mxu1 %v61_v56  ;;  %3120 = vmatpush3.msra.mxu0 %v28_v57 }
  0x20   :  { %3157 = vmatprep.subr.mxu1 %v76_v58  ;;  %3121 = vmatprep.subr.mxu0 %v43_v59 }
  0x21   :  { %189 = vmatprep.mubr.f32.mxu0 %v16_v60  ;;  %3122 = vmatpush3.msra.mxu0 %v27_v61 }
  0x22   :  { %3158 = vmatpush3.msra.mxu1 %v60_v62  ;;  %190 = vmatmul.mubr.f32.vlgmr.msra.gmra.mxu0 %v15_v63 }
  0x23   :  { %3159 = vmatprep.subr.mxu1 %v75_v0  ;;  %3167 = vmatprep.subr.mxu0 %v122_v1 }
  0x24   :  { %3160 = vmatpush3.msra.mxu1 %v59_v2  ;;  %264 = vmatprep.mubr.f32.mxu1 %v18_v3 }
  0x25   :  { %3168 = vmatpush3.msra.mxu0 %v106_v4  ;;  %265 = vmatmul.mubr.f32.vlgmr.msra.gmra.mxu1 %v17_v5 }
  0x26   :  { %3169 = vmatprep.subr.mxu0 %v121_v6 }
  0x27   :  { %8 = vsyncpa [#allocation3], 0  ;;  %3170 = vmatpush3.msra.mxu0 %v105_v7  ;;  %v119_v13 = vld [vmem:[%s4913_s1 + $0x2e0] sm:$0xff]  ;;  %194 = vmatprep.mubr.f32.mxu0 %v22_v8  ;;  %v20_v16 = vld [vmem:[%s4912_s0 + $0x28] sm:$0xff]  ;;  %vm370_vm0 = vcmask 261120   ;;  %vm789_vm1 = vcmask 523264  }
  0x28   :  { %v23_v14 = vld [vmem:[%s4912_s0 + $0x40] sm:$0xff]  ;;  %3171 = vmatprep.subr.mxu0 %v120_v9  ;;  %195 = vmatmul.mubr.f32.gmra.mxu0 %v21_v10  ;;  %v118_v17 = vld [vmem:[%s4913_s1 + $0x2d8] sm:$0xff]  ;;  %v117_v19 = vld [vmem:[%s4913_s1 + $0x2d0] sm:$0xff]  ;;  %vm3829_vm2 = vmmov 0   ;;  %vm2286_vm3 = vcmask 130048   ;;  %vm2362_vm4 = vcmask 254976  }
  0x29   :  { %v103_v15 = vld [vmem:[%s4913_s1 + $0x260] sm:$0xff]  ;;  %3172 = vmatpush3.msra.mxu0 %v104_v11  ;;  %269 = vmatprep.mubr.f32.mxu1 %v24_v12  ;;  %v102_v18 = vld [vmem:[%s4913_s1 + $0x258] sm:$0xff]  ;;  %v101_v20 = vld [vmem:[%s4913_s1 + $0x250] sm:$0xff]  ;;  %s3830_s18 = smov [#allocation2]   ;;  %vm2985_vm5 = vcmask 9216  }
  0x2a   :  { %3173 = vmatprep.subr.mxu0 %v119_v13  ;;  %270 = vmatmul.mubr.f32.gmra.mxu1 %v23_v14  ;;  %v116_v21 = vld [vmem:[%s4913_s1 + $0x2c8] sm:$0xff]  ;;  %v115_v23 = vld [vmem:[%s4913_s1 + $0x2c0] sm:$0xff]  ;;  %v114_v25 = vld [vmem:[%s4913_s1 + $0x2b8] sm:$0xff]  ;;  %s2993_s19 = sshll.u32 %s3830_s18, 4  ;;  %s2994_s19 = int_to_ptr.vmem [resolvable:$true] %s2993_s19 }
  0x2b   :  { %3174 = vmatpush3.msra.mxu0 %v103_v15  ;;  %339 = vmatprep.mubr.f32.mxu0 %v20_v16  ;;  %v100_v22 = vld [vmem:[%s4913_s1 + $0x248] sm:$0xff]  ;;  %v99_v24 = vld [vmem:[%s4913_s1 + $0x240] sm:$0xff]  ;;  %v98_v26 = vld [vmem:[%s4913_s1 + $0x238] sm:$0xff]  ;;  %s3806_s20 = scalar_lea.vmem %s2994_s19, 32  ;;  %p3811_p1 = scmp.lt.s32.totalorder %s2994_s19, %s2994_s19 }
  0x2c   :  { %3175 = vmatprep.subr.mxu0 %v118_v17  ;;  %v113_v27 = vld [vmem:[%s4913_s1 + $0x2b0] sm:$0xff]  ;;  %v112_v29 = vld [vmem:[%s4913_s1 + $0x2a8] sm:$0xff]  ;;  %v111_v31 = vld [vmem:[%s4913_s1 + $0x2a0] sm:$0xff]  ;;  %p3807_p0 = scmp.ne.s32.totalorder %s2994_s19, %s3806_s20  ;;  %p3812_p2 = scmp.lt.s32.totalorder %s3806_s20, %s3806_s20 }
  0x2d   :  { %3176 = vmatpush3.msra.mxu0 %v102_v18  ;;  %v97_v28 = vld [vmem:[%s4913_s1 + $0x230] sm:$0xff]  ;;  %v96_v30 = vld [vmem:[%s4913_s1 + $0x228] sm:$0xff]  ;;  %v95_v32 = vld [vmem:[%s4913_s1 + $0x220] sm:$0xff] }
  0x2e   :  { %3177 = vmatprep.subr.mxu0 %v117_v19  ;;  %v110_v33 = vld [vmem:[%s4913_s1 + $0x298] sm:$0xff]  ;;  %v109_v35 = vld [vmem:[%s4913_s1 + $0x290] sm:$0xff]  ;;  %v108_v37 = vld [vmem:[%s4913_s1 + $0x288] sm:$0xff]  ;;  %p3813_p3 = por %p3812_p2, %p3811_p1 }
  0x2f   :  { %3178 = vmatpush3.msra.mxu0 %v101_v20  ;;  %v94_v34 = vld [vmem:[%s4913_s1 + $0x218] sm:$0xff]  ;;  %v93_v36 = vld [vmem:[%s4913_s1 + $0x210] sm:$0xff]  ;;  %v92_v38 = vld [vmem:[%s4913_s1 + $0x208] sm:$0xff] }
  0x30   :  { %3179 = vmatprep.subr.mxu0 %v116_v21  ;;  %v107_v39 = vld [vmem:[%s4913_s1 + $0x280] sm:$0xff]  ;;  %v26_v42 = vld [vmem:[%s4912_s0 + $0x58] sm:$0xff]  ;;  %v25_v43 = vld [vmem:[%s4912_s0 + $0x50] sm:$0xff]  ;;  %p3814_p4 = pnand %p3813_p3, %p3807_p0 }
  0x31   :  { %3180 = vmatpush3.msra.mxu0 %v100_v22  ;;  %v91_v40 = vld [vmem:[%s4913_s1 + $0x200] sm:$0xff]  ;;  %v124_v56 = vld [vmem:[%s4913_s1 + $0x308] sm:$0xff]  ;;  %v411_v20 = vld [vmem:[%s4913_s1 + $0x338] sm:$0xff] }
  0x32   :  { %3181 = vmatprep.subr.mxu0 %v115_v23  ;;  %v19_v41 = vld [vmem:[%s4912_s0 + $0x20] sm:$0xff]  ;;  %v413_v18 = vld [vmem:[%s4913_s1 + $0x348] sm:$0xff]  ;;  %v410_v21 = vld [vmem:[%s4913_s1 + $0x330] sm:$0xff] }
  0x33   :  { %3182 = vmatpush3.msra.mxu0 %v99_v24  ;;  %v123_v50 = vld [vmem:[%s4913_s1 + $0x300] sm:$0xff]  ;;  %3390 = vmatprep.subr.mxu1 %v413_v18  ;;  %v503_v22 = vld [vmem:[%s4913_s1 + $0x370] sm:$0xff] }
  0x34   :  { %3183 = vmatprep.subr.mxu0 %v114_v25  ;;  %v412_v19 = vld [vmem:[%s4913_s1 + $0x340] sm:$0xff]  ;;  %3391 = vmatpush3.msra.mxu1 %v413_v18 }
  0x35   :  { %3184 = vmatpush3.msra.mxu0 %v98_v26  ;;  %3392 = vmatprep.subr.mxu1 %v412_v19 }
  0x36   :  { %3185 = vmatprep.subr.mxu0 %v113_v27  ;;  %3393 = vmatpush3.msra.mxu1 %v412_v19  ;;  %v4368_v19 = vld [vmem:[%s4913_s1 + $0x698] sm:$0xff] }
  0x37   :  { %3186 = vmatpush3.msra.mxu0 %v97_v28  ;;  %3394 = vmatprep.subr.mxu1 %v411_v20 }
  0x38   :  { %3187 = vmatprep.subr.mxu0 %v112_v29  ;;  %3395 = vmatpush3.msra.mxu1 %v411_v20 }
  0x39   :  { %3188 = vmatpush3.msra.mxu0 %v96_v30  ;;  %3396 = vmatprep.subr.mxu1 %v410_v21  ;;  %v3001_v30 = vld [vmem:[%s4913_s1 + $0x320] ss:$0 sm:$0xff] }
  0x3a   :  { %3189 = vmatprep.subr.mxu0 %v111_v31  ;;  %3397 = vmatpush3.msra.mxu1 %v410_v21 }
  0x3b   :  { %3190 = vmatpush3.msra.mxu0 %v95_v32  ;;  %3401 = vmatprep.subr.mxu1 %v503_v22  ;;  %v3002_v32 = vld [vmem:[%s4913_s1 + $0x328] ss:$0 sm:$0xff] }
  0x3c   :  { %3191 = vmatprep.subr.mxu0 %v110_v33 }
  0x3d   :  { %3192 = vmatpush3.msra.mxu0 %v94_v34 }
  0x3e   :  { %3193 = vmatprep.subr.mxu0 %v109_v35 }
  0x3f   :  { %3194 = vmatpush3.msra.mxu0 %v93_v36 }
  0x40   :  { %3195 = vmatprep.subr.mxu0 %v108_v37 }
  0x41   :  { %3196 = vmatpush3.msra.mxu0 %v92_v38 }
  0x42   :  { %3197 = vmatprep.subr.mxu0 %v107_v39  ;;  %v502_v39 = vld [vmem:[%s4913_s1 + $0x368] sm:$0xff] }
  0x43   :  { %3198 = vmatpush3.msra.mxu0 %v91_v40  ;;  %v501_v40 = vld [vmem:[%s4913_s1 + $0x360] sm:$0xff] }
  0x44   :  { %340 = vmatmul.mubr.f32.vlgmr.msra.gmra.mxu0 %v19_v41  ;;  %v500_v41 = vld [vmem:[%s4913_s1 + $0x358] sm:$0xff] }
  0x45   :  { %344 = vmatprep.mubr.f32.mxu0 %v26_v42  ;;  %v587_v42 = vld [vmem:[%s4913_s1 + $0x398] sm:$0xff] }
  0x48   :  { %345 = vmatmul.mubr.f32.gmra.mxu0 %v25_v43  ;;  %v586_v43 = vld [vmem:[%s4913_s1 + $0x390] sm:$0xff] }
  0xe2   :  { %v3123_v44 = vpop.f32.mrf.mxu0 }
  0xe4   :  { %v3124_v45 = vpop.f32.mrf.mxu0 }
  0xe5   :  { %v3161_v46 = vpop.f32.mrf.mxu1  ;;  %v3125_v49 = vadd.f32 %v3124_v45, %v3123_v44  ;;  %v585_v44 = vld [vmem:[%s4913_s1 + $0x388] sm:$0xff]  ;;  %v584_v45 = vld [vmem:[%s4913_s1 + $0x380] sm:$0xff] }
  0xe7   :  { %v3162_v48 = vpop.f32.mrf.mxu1  ;;  %v192_v53 = vadd.f32 %v3125_v49, %v123_v50  ;;  %v4265_v49 = vld [vmem:[%s4914_s2 + $0x80] sm:$0xff]  ;;  %v4272_v50 = vld [vmem:[%s4914_s2 + $0x78] sm:$0xff] }
  0xe8   :  { %v3126_v47 = vpop.f32.mrf.mxu0  ;;  %v3163_v54 = vadd.f32 %v3162_v48, %v3161_v46  ;;  %v4244_v46 = vld [vmem:[%s4914_s2 + $0x98] sm:$0xff]  ;;  %v4258_v48 = vld [vmem:[%s4914_s2 + $0x88] sm:$0xff] }
  0xe9   :  { %3442 = vmatprep.subr.mxu0 %v4244_v46 }
  0xea   :  { %v3127_v51 = vpop.f32.mrf.mxu0  ;;  %v3164_v52 = vpop.f32.mrf.mxu1  ;;  %v267_v60 = vadd.f32 %v3163_v54, %v192_v53  ;;  %3443 = vmatpush3.msra.mxu0 %v4244_v46  ;;  %v4293_v53 = vld [vmem:[%s4914_s2 + $0x60] sm:$0xff] }
  0xeb   :  { %v3128_v55 = vadd.f32 %v3127_v51, %v3126_v47  ;;  %v4251_v47 = vld [vmem:[%s4914_s2 + $0x90] sm:$0xff] }
  0xec   :  { %v3165_v57 = vpop.f32.mrf.mxu1  ;;  %3444 = vmatprep.subr.mxu0 %v4251_v47  ;;  %v4279_v51 = vld [vmem:[%s4914_s2 + $0x70] sm:$0xff] }
  0xed   :  { %v197_v61 = vadd.f32 %v3128_v55, %v124_v56  ;;  %v3166_v62 = vadd.f32 %v3165_v57, %v3164_v52  ;;  %3445 = vmatpush3.msra.mxu0 %v4251_v47  ;;  %v4286_v52 = vld [vmem:[%s4914_s2 + $0x68] sm:$0xff]  ;;  %v3003_v55 = vld [vmem:[%s4913_s1 + $0x350] ss:$0 sm:$0xff] }
  0xee   :  { %3446 = vmatprep.subr.mxu0 %v4258_v48 }
  0xef   :  { %v272_v3 = vadd.f32 %v3166_v62, %v197_v61  ;;  %3447 = vmatpush3.msra.mxu0 %v4258_v48 }
  0xf0   :  { %3448 = vmatprep.subr.mxu0 %v4265_v49 }
  0xf1   :  { %3449 = vmatpush3.msra.mxu0 %v4265_v49 }
  0xf2   :  { %3450 = vmatprep.subr.mxu0 %v4272_v50 }
  0xf3   :  { %3451 = vmatpush3.msra.mxu0 %v4272_v50 }
  0xf4   :  { %3452 = vmatprep.subr.mxu0 %v4279_v51 }
  0xf5   :  { %3453 = vmatpush3.msra.mxu0 %v4279_v51 }
  0xf6   :  { %3454 = vmatprep.subr.mxu0 %v4286_v52 }
  0xf7   :  { %3455 = vmatpush3.msra.mxu0 %v4286_v52 }
  0xf8   :  { %3456 = vmatprep.subr.mxu0 %v4293_v53 }
  0xf9   :  { %3457 = vmatpush3.msra.mxu0 %v4293_v53 }
 0x104   :  { %v3199_v58 = vpop.f32.mrf.mxu0 }
 0x106   :  { %v3200_v59 = vpop.f32.mrf.mxu0 }
 0x107   :  { %v3201_v63 = vadd.f32 %v3200_v59, %v3199_v58  ;;  %v3006_v58 = vld [vmem:[%s4913_s1 + $0x378] ss:$0 sm:$0xff] }
 0x108   :  { %v3202_v0 = vpop.f32.mrf.mxu0 }
 0x109   :  { %v4181_v1 = vadd.f32 %v3201_v63, %v267_v60  ;;  %v4307_v60 = vld [vmem:[%s4913_s1 + $0x6d0] sm:$0xff]  ;;  %v4312_v63 = vld [vmem:[%s4913_s1 + $0x6c8] sm:$0xff] }
 0x10a   :  { %v3203_v2 = vpop.f32.mrf.mxu0 }
 0x10b   :  { %v3204_v4 = vadd.f32 %v3203_v2, %v3202_v0  ;;  %v371_v5 = vsel %vm370_vm0, %v4181_v1, 0.0 }
 0x10c   :  { %372 = vadd.xlane.f32.xlu0 %v371_v5  ;;  %v4324_v5 = vld [vmem:[%s4913_s1 + $0x6c0] sm:$0xff] }
 0x10d   :  { %v4185_v6 = vadd.f32 %v3204_v4, %v272_v3  ;;  %v3009_v4 = vld [vmem:[%s4913_s1 + $0x3a0] ss:$0 sm:$0xff] }
 0x10f   :  { %v374_v7 = vsel %vm370_vm0, %v4185_v6, 0.0 }
 0x110   :  { %375 = vadd.xlane.f32.xlu0 %v374_v7 }
 0x195   :  { %v373_v8 = vpop.xlane.xlu0 %372 }
 0x196   :  { %v378_v9 = vmul.f32 0.03125, %v373_v8 }
 0x198   :  { %v380_v10 = vsub.f32 %v4181_v1, %v378_v9 }
 0x199   :  { %v376_v11 = vpop.xlane.xlu0 %375 }
 0x19a   :  { %v379_v12 = vmul.f32 0.03125, %v376_v11  ;;  %v382_v13 = vmul.f32 %v380_v10, %v380_v10 }
 0x19c   :  { %v381_v14 = vsub.f32 %v4185_v6, %v379_v12  ;;  %v384_v15 = vsel %vm370_vm0, %v382_v13, 0.0  ;;  %v4344_v13 = vld [vmem:[%s4913_s1 + $0x6b0] sm:$0xff] }
 0x19d   :  { %385 = vadd.xlane.f32.xlu1 %v384_v15  ;;  %v4352_v15 = vld [vmem:[%s4913_s1 + $0x6a8] sm:$0xff] }
 0x19e   :  { %v383_v16 = vmul.f32 %v381_v14, %v381_v14 }
 0x1a0   :  { %v387_v17 = vsel %vm370_vm0, %v383_v16, 0.0 }
 0x1a1   :  { %388 = vadd.xlane.f32.xlu1 %v387_v17  ;;  %v4360_v17 = vld [vmem:[%s4913_s1 + $0x6a0] sm:$0xff] }
 0x226   :  { %v386_v23 = vpop.xlane.xlu1 %385 }
 0x227   :  { %v390_v24 = vmul.f32 0.03125, %v386_v23  ;;  %v4379_v23 = vld [vmem:[%s4914_s2 + $0x58] sm:$0xff] }
 0x229   :  { %v392_v25 = vadd.f32 1e-05, %v390_v24 }
 0x22a   :  { %v389_v26 = vpop.xlane.xlu1 %388 }
 0x22b   :  { %3748 = vrsqrt.f32 %v392_v25  ;;  %v391_v27 = vmul.f32 0.03125, %v389_v26  ;;  %v4384_v25 = vld [vmem:[%s4914_s2 + $0x50] sm:$0xff] }
 0x22d   :  { %v393_v28 = vadd.f32 1e-05, %v391_v27 }
 0x22f   :  { %3750 = vrsqrt.f32 %v393_v28 }
 0x238   :  { %v3749_v29 = vpop.eup %3748 }
 0x239   :  { %v396_v31 = vmul.f32 %v3749_v29, %v380_v10  ;;  %v4334_v10 = vld [vmem:[%s4913_s1 + $0x6b8] sm:$0xff] }
 0x23b   :  { %v402_v33 = vmul.f32 %v3001_v30, %v396_v31 }
 0x23c   :  { %v3751_v34 = vpop.eup %3750 }
 0x23d   :  { %v397_v35 = vmul.f32 %v3751_v34, %v381_v14  ;;  %v408_v36 = vadd.f32 %v3002_v32, %v402_v33 }
 0x23f   :  { %v403_v37 = vmul.f32 %v3001_v30, %v397_v35  ;;  %3398 = vmatprep.mubr.msk.f32.mxu1 %vm370_vm0, %v408_v36 }
 0x241   :  { %v409_v38 = vadd.f32 %v3002_v32, %v403_v37 }
 0x243   :  { %3399 = vmatmul.mubr.msk.f32.vlgmr.msra.gmra.mxu1 %vm370_vm0, %v409_v38 }
 0x244   :  { %3402 = vmatpush3.msra.mxu1 %v503_v22  ;;  %3409 = vmatprep.mubr.msk.f32.mxu1 %vm370_vm0, %v408_v36 }
 0x245   :  { %3403 = vmatprep.subr.mxu1 %v502_v39 }
 0x246   :  { %3404 = vmatpush3.msra.mxu1 %v502_v39 }
 0x247   :  { %3405 = vmatprep.subr.mxu1 %v501_v40 }
 0x248   :  { %3406 = vmatpush3.msra.mxu1 %v501_v40 }
 0x249   :  { %3407 = vmatprep.subr.mxu1 %v500_v41 }
 0x24a   :  { %3408 = vmatpush3.msra.mxu1 %v500_v41 }
 0x24b   :  { %3410 = vmatmul.mubr.msk.f32.vlgmr.msra.gmra.mxu1 %vm370_vm0, %v409_v38  ;;  %3412 = vmatprep.subr.mxu1 %v587_v42 }
 0x24c   :  { %3413 = vmatpush3.msra.mxu1 %v587_v42  ;;  %3420 = vmatprep.mubr.msk.f32.mxu1 %vm370_vm0, %v408_v36 }
 0x24d   :  { %3414 = vmatprep.subr.mxu1 %v586_v43 }
 0x24e   :  { %3415 = vmatpush3.msra.mxu1 %v586_v43 }
 0x24f   :  { %3416 = vmatprep.subr.mxu1 %v585_v44 }
 0x250   :  { %3417 = vmatpush3.msra.mxu1 %v585_v44 }
 0x251   :  { %3418 = vmatprep.subr.mxu1 %v584_v45 }
 0x252   :  { %3419 = vmatpush3.msra.mxu1 %v584_v45 }
 0x253   :  { %3421 = vmatmul.mubr.msk.f32.vlgmr.msra.gmra.mxu1 %vm370_vm0, %v409_v38 }
 0x303   :  { %v3400_v54 = vpop.f32.mrf.mxu1 }
 0x304   :  { %v497_v21 = vadd.f32 %v3400_v54, %v3003_v55 }
 0x305   :  { %v491_v56 = vpop.f32.mrf.mxu1 }
 0x306   :  { %v492_v57 = vadd.f32 %v3003_v55, %v491_v56  ;;  %v971_v55 = vld [vmem:[%s4913_s1 + $0x3c0] sm:$0xff]  ;;  %v970_v56 = vld [vmem:[%s4913_s1 + $0x3b8] sm:$0xff] }
 0x308   :  { %3439 = vmatprep.mubr.msk.f32.mxu1 %vm370_vm0, %v492_v57 }
 0x30b   :  { %v3411_v59 = vpop.f32.mrf.mxu1 }
 0x30c   :  { %v581_v61 = vadd.f32 %v3411_v59, %v3006_v58 }
 0x30d   :  { %v575_v62 = vpop.f32.mrf.mxu1 }
 0x30e   :  { %v576_v0 = vadd.f32 %v3006_v58, %v575_v62  ;;  %v675_v2 = vmul.f32 %v581_v61, %v4307_v60  ;;  %v673_v9 = vmul.f32 %v581_v61, %v4324_v5  ;;  %v671_v14 = vmul.f32 %v581_v61, %v4344_v13 }
 0x30f   :  { %v669_v18 = vmul.f32 %v581_v61, %v4360_v17 }
 0x310   :  { %3423 = vmatprep.subr.msk.mxu1 %vm370_vm0, %v675_v2  ;;  %v674_v3 = vmul.f32 %v576_v0, %v4312_v63  ;;  %v672_v12 = vmul.f32 %v576_v0, %v4334_v10  ;;  %v670_v16 = vmul.f32 %v576_v0, %v4352_v15  ;;  %v668_v20 = vmul.f32 %v576_v0, %v4368_v19 }
 0x311   :  { %3424 = vmatpush3.xpose.msk.msra.mxu1 %vm370_vm0, %v675_v2  ;;  %v969_v2 = vld [vmem:[%s4913_s1 + $0x3b0] sm:$0xff] }
 0x312   :  { %3425 = vmatprep.subr.msk.mxu1 %vm370_vm0, %v674_v3 }
 0x313   :  { %v3422_v7 = vpop.f32.mrf.mxu1 }
 0x314   :  { %v4327_v8 = vadd.f32 %v3422_v7, %v3009_v4 }
 0x315   :  { %3426 = vmatpush3.xpose.msk.msra.mxu1 %vm370_vm0, %v674_v3  ;;  %v659_v22 = vpop.f32.mrf.mxu1  ;;  %v968_v3 = vld [vmem:[%s4913_s1 + $0x3a8] sm:$0xff] }
 0x316   :  { %3427 = vmatprep.subr.msk.mxu1 %vm370_vm0, %v673_v9  ;;  %v683_v11 = vmul.f32 %v4327_v8, %v4307_v60  ;;  %v660_v37 = vadd.f32 %v3009_v4, %v659_v22  ;;  %v681_v41 = vmul.f32 %v4327_v8, %v4324_v5  ;;  %v679_v43 = vmul.f32 %v4327_v8, %v4344_v13 }
 0x317   :  { %v677_v45 = vmul.f32 %v4327_v8, %v4360_v17  ;;  %v3026_v8 = vld [vmem:[%s4913_s1 + $0x3c8] ss:$0 sm:$0xff] }
 0x318   :  { %3461 = vmatprep.subr.mxu0 %v683_v11  ;;  %v682_v40 = vmul.f32 %v660_v37, %v4312_v63  ;;  %v680_v42 = vmul.f32 %v660_v37, %v4334_v10  ;;  %v678_v44 = vmul.f32 %v660_v37, %v4352_v15  ;;  %v676_v54 = vmul.f32 %v660_v37, %v4368_v19 }
 0x319   :  { %3428 = vmatpush3.xpose.msk.msra.mxu1 %vm370_vm0, %v673_v9 }
 0x31a   :  { %3429 = vmatprep.subr.msk.mxu1 %vm370_vm0, %v672_v12 }
 0x31d   :  { %3430 = vmatpush3.xpose.msk.msra.mxu1 %vm370_vm0, %v672_v12 }
 0x31e   :  { %3431 = vmatprep.subr.msk.mxu1 %vm370_vm0, %v671_v14 }
 0x321   :  { %3432 = vmatpush3.xpose.msk.msra.mxu1 %vm370_vm0, %v671_v14 }
 0x322   :  { %3433 = vmatprep.subr.msk.mxu1 %vm370_vm0, %v670_v16 }
 0x325   :  { %3434 = vmatpush3.xpose.msk.msra.mxu1 %vm370_vm0, %v670_v16 }
 0x326   :  { %3435 = vmatprep.subr.msk.mxu1 %vm370_vm0, %v669_v18 }
 0x329   :  { %3436 = vmatpush3.xpose.msk.msra.mxu1 %vm370_vm0, %v669_v18 }
 0x32a   :  { %3437 = vmatprep.subr.msk.mxu1 %vm370_vm0, %v668_v20 }
 0x32d   :  { %3438 = vmatpush3.xpose.msk.msra.mxu1 %vm370_vm0, %v668_v20 }
 0x32e   :  { %3480 = vmatprep.subr.mxu1 %v971_v55 }
 0x330   :  { %3440 = vmatmul.mubr.msk.f32.vlgmr.msra.gmra.mxu1 %vm370_vm0, %v497_v21 }
 0x331   :  { %3481 = vmatpush3.msra.mxu1 %v971_v55 }
 0x332   :  { %3482 = vmatprep.subr.mxu1 %v970_v56 }
 0x333   :  { %3483 = vmatpush3.msra.mxu1 %v970_v56  ;;  %v3030_v56 = vld [vmem:[%s4913_s1 + $0x3d8] ss:$0 sm:$0xff] }
 0x334   :  { %3484 = vmatprep.subr.mxu1 %v969_v2 }
 0x335   :  { %3485 = vmatpush3.msra.mxu1 %v969_v2  ;;  %v1220_v2 = vld [vmem:[%s4913_s1 + $0x440] sm:$0xff] }
 0x336   :  { %3486 = vmatprep.subr.mxu1 %v968_v3 }
 0x337   :  { %3487 = vmatpush3.msra.mxu1 %v968_v3  ;;  %v1219_v3 = vld [vmem:[%s4913_s1 + $0x438] sm:$0xff] }
 0x3f0   :  { %v3441_v24 = vpop.f32.mrf.mxu1 }
 0x3f1   :  { %v786_v26 = vadd.f32 %v3441_v24, %v4379_v23 }
 0x3f2   :  { %v780_v27 = vpop.f32.mrf.mxu1 }
 0x3f3   :  { %v781_v28 = vadd.f32 %v780_v27, %v4384_v25  ;;  %v793_v29 = vsel %vm789_vm1, %v786_v26, -inf }
 0x3f4   :  { %794 = vmax.xlane.f32.xlu1 %v793_v29 }
 0x3f5   :  { %v790_v30 = vsel %vm789_vm1, %v781_v28, -inf }
 0x3f6   :  { %791 = vmax.xlane.f32.xlu0 %v790_v30 }
 0x47d   :  { %v795_v31 = vpop.xlane.xlu1 %794 }
 0x47e   :  { %v797_v32 = vsub.f32 %v786_v26, %v795_v31 }
 0x47f   :  { %v792_v33 = vpop.xlane.xlu0 %791 }
 0x480   :  { %v796_v34 = vsub.f32 %v781_v28, %v792_v33  ;;  %v800_v35 = vmul.f32 1.442695, %v797_v32  ;;  %v1103_v32 = vld [vmem:[%s4914_s2 + $0x18] sm:$0xff]  ;;  %v1102_v33 = vld [vmem:[%s4914_s2 + $0x10] sm:$0xff] }
 0x482   :  { %v798_v36 = vmul.f32 1.442695, %v796_v34  ;;  %v1101_v34 = vld [vmem:[%s4914_s2 + $0x8] sm:$0xff] }
 0x484   :  { %3752 = vpow2.f32 %v798_v36 }
 0x485   :  { %3754 = vpow2.f32 %v800_v35  ;;  %v1100_v35 = vld [vmem:[%s4914_s2] sm:$0xff] }
 0x491   :  { %v3753_v38 = vpop.eup %3752 }
 0x492   :  { %v3755_v39 = vpop.eup %3754  ;;  %3458 = vmatprep.mubr.msk.f32.mxu0 %vm789_vm1, %v3753_v38 }
 0x493   :  { %3459 = vmatmul.mubr.msk.f32.vlgmr.msra.gmra.mxu0 %vm789_vm1, %v3755_v39 }
 0x494   :  { %3462 = vmatpush3.msra.mxu0 %v683_v11 }
 0x495   :  { %3463 = vmatprep.subr.mxu0 %v682_v40 }
 0x496   :  { %3464 = vmatpush3.msra.mxu0 %v682_v40 }
 0x497   :  { %3465 = vmatprep.subr.mxu0 %v681_v41 }
 0x498   :  { %3466 = vmatpush3.msra.mxu0 %v681_v41 }
 0x499   :  { %3467 = vmatprep.subr.mxu0 %v680_v42 }
 0x49a   :  { %3468 = vmatpush3.msra.mxu0 %v680_v42 }
 0x49b   :  { %3469 = vmatprep.subr.mxu0 %v679_v43 }
 0x49c   :  { %3470 = vmatpush3.msra.mxu0 %v679_v43  ;;  %v3029_v43 = vld [vmem:[%s4913_s1 + $0x3d0] ss:$0 sm:$0xff] }
 0x49d   :  { %3471 = vmatprep.subr.mxu0 %v678_v44 }
 0x49e   :  { %3472 = vmatpush3.msra.mxu0 %v678_v44 }
 0x49f   :  { %3473 = vmatprep.subr.mxu0 %v677_v45 }
 0x4a0   :  { %3474 = vmatpush3.msra.mxu0 %v677_v45 }
 0x4a1   :  { %3475 = vmatprep.subr.mxu0 %v676_v54 }
 0x4a2   :  { %3476 = vmatpush3.msra.mxu0 %v676_v54 }
 0x4a3   :  { %3491 = vmatprep.subr.mxu0 %v1103_v32 }
 0x553   :  { %v3460_v57 = vpop.f32.mrf.mxu0 }
 0x554   :  { %3756 = vrcp.f32 %v3460_v57 }
 0x555   :  { %v874_v58 = vpop.f32.mrf.mxu0 }
 0x556   :  { %3758 = vrcp.f32 %v874_v58 }
 0x561   :  { %v3757_v59 = vpop.eup %3756 }
 0x562   :  { %v886_v0 = vmul.f32 %v3757_v59, %v3755_v39 }
 0x563   :  { %v3759_v61 = vpop.eup %3758 }
 0x564   :  { %v884_v62 = vmul.f32 %v3759_v61, %v3753_v38  ;;  %v1223_v61 = vld [vmem:[%s4913_s1 + $0x458] sm:$0xff] }
 0x565   :  { %3502 = vmatprep.subr.mxu1 %v1223_v61 }
 0x566   :  { %3477 = vmatprep.mubr.msk.f32.mxu0 %vm789_vm1, %v884_v62  ;;  %v1222_v62 = vld [vmem:[%s4913_s1 + $0x450] sm:$0xff] }
 0x567   :  { %3478 = vmatmul.mubr.msk.f32.vlgmr.msra.gmra.mxu0 %vm789_vm1, %v886_v0  ;;  %v1221_v0 = vld [vmem:[%s4913_s1 + $0x448] sm:$0xff] }
 0x568   :  { %3492 = vmatpush3.msra.mxu0 %v1103_v32 }
 0x569   :  { %3493 = vmatprep.subr.mxu0 %v1102_v33 }
 0x56a   :  { %3494 = vmatpush3.msra.mxu0 %v1102_v33 }
 0x56b   :  { %3495 = vmatprep.subr.mxu0 %v1101_v34 }
 0x56c   :  { %3496 = vmatpush3.msra.mxu0 %v1101_v34 }
 0x56d   :  { %3497 = vmatprep.subr.mxu0 %v1100_v35 }
 0x56e   :  { %3498 = vmatpush3.msra.mxu0 %v1100_v35 }
 0x627   :  { %v3479_v4 = vpop.f32.mrf.mxu0 }
 0x629   :  { %v959_v7 = vpop.f32.mrf.mxu0 }
 0x62a   :  { %3488 = vmatprep.mubr.msk.f32.mxu1 %vm370_vm0, %v959_v7  ;;  %v1217_v7 = vld [vmem:[%s4913_s1 + $0x428] sm:$0xff] }
 0x62b   :  { %3489 = vmatmul.mubr.msk.f32.vlgmr.msra.gmra.mxu1 %vm370_vm0, %v3479_v4  ;;  %v1218_v4 = vld [vmem:[%s4913_s1 + $0x430] sm:$0xff] }
 0x62c   :  { %3503 = vmatpush3.msra.mxu1 %v1223_v61 }
 0x62d   :  { %3504 = vmatprep.subr.mxu1 %v1222_v62 }
 0x62e   :  { %3505 = vmatpush3.msra.mxu1 %v1222_v62 }
 0x62f   :  { %3506 = vmatprep.subr.mxu1 %v1221_v0 }
 0x630   :  { %3507 = vmatpush3.msra.mxu1 %v1221_v0 }
 0x631   :  { %3508 = vmatprep.subr.mxu1 %v1220_v2 }
 0x632   :  { %3509 = vmatpush3.msra.mxu1 %v1220_v2 }
 0x633   :  { %3510 = vmatprep.subr.mxu1 %v1219_v3 }
 0x634   :  { %3511 = vmatpush3.msra.mxu1 %v1219_v3  ;;  %v1351_v3 = vld [vmem:[%s4913_s1 + $0x490] sm:$0xff] }
 0x635   :  { %3512 = vmatprep.subr.mxu1 %v1218_v4  ;;  %3537 = vmatprep.subr.mxu0 %v1351_v3 }
 0x636   :  { %3513 = vmatpush3.msra.mxu1 %v1218_v4  ;;  %v1350_v4 = vld [vmem:[%s4913_s1 + $0x488] sm:$0xff] }
 0x637   :  { %3514 = vmatprep.subr.mxu1 %v1217_v7 }
 0x638   :  { %3515 = vmatpush3.msra.mxu1 %v1217_v7  ;;  %v1349_v7 = vld [vmem:[%s4913_s1 + $0x480] sm:$0xff] }
 0x6eb   :  { %v3490_v9 = vpop.f32.mrf.mxu1 }
 0x6ec   :  { %v1055_v11 = vadd.f32 %v3490_v9, %v3026_v8  ;;  %v1215_v9 = vld [vmem:[%s4913_s1 + $0x418] sm:$0xff] }
 0x6ed   :  { %v1049_v12 = vpop.f32.mrf.mxu1 }
 0x6ee   :  { %v4422_v14 = vadd.f32 %v1055_v11, %v4185_v6  ;;  %v1050_v16 = vadd.f32 %v3026_v8, %v1049_v12  ;;  %v1216_v8 = vld [vmem:[%s4913_s1 + $0x420] sm:$0xff]  ;;  %v1214_v11 = vld [vmem:[%s4913_s1 + $0x410] sm:$0xff]  ;;  %v1213_v12 = vld [vmem:[%s4913_s1 + $0x408] sm:$0xff] }
 0x6ef   :  { %3516 = vmatprep.subr.mxu1 %v1216_v8 }
 0x6f0   :  { %v4425_v18 = vadd.f32 %v1050_v16, %v4181_v1  ;;  %v1065_v20 = vsel %vm370_vm0, %v4422_v14, 0.0  ;;  %3517 = vmatpush3.msra.mxu1 %v1216_v8  ;;  %v1212_v16 = vld [vmem:[%s4913_s1 + $0x400] sm:$0xff]  ;;  %v1348_v8 = vld [vmem:[%s4913_s1 + $0x478] sm:$0xff] }
 0x6f1   :  { %1066 = vadd.xlane.f32.xlu1 %v1065_v20  ;;  %3518 = vmatprep.subr.mxu1 %v1215_v9  ;;  %v1211_v20 = vld [vmem:[%s4913_s1 + $0x3f8] sm:$0xff] }
 0x6f2   :  { %v1062_v21 = vsel %vm370_vm0, %v4425_v18, 0.0  ;;  %3519 = vmatpush3.msra.mxu1 %v1215_v9  ;;  %v1441_v9 = vld [vmem:[%s4913_s1 + $0x4b8] sm:$0xff] }
 0x6f3   :  { %1063 = vadd.xlane.f32.xlu0 %v1062_v21  ;;  %3520 = vmatprep.subr.mxu1 %v1214_v11  ;;  %v1210_v21 = vld [vmem:[%s4913_s1 + $0x3f0] sm:$0xff] }
 0x6f4   :  { %3521 = vmatpush3.msra.mxu1 %v1214_v11 }
 0x6f5   :  { %3522 = vmatprep.subr.mxu1 %v1213_v12 }
 0x6f6   :  { %3523 = vmatpush3.msra.mxu1 %v1213_v12 }
 0x6f7   :  { %3524 = vmatprep.subr.mxu1 %v1212_v16 }
 0x6f8   :  { %3525 = vmatpush3.msra.mxu1 %v1212_v16 }
 0x6f9   :  { %3526 = vmatprep.subr.mxu1 %v1211_v20 }
 0x6fa   :  { %3527 = vmatpush3.msra.mxu1 %v1211_v20 }
 0x6fb   :  { %3528 = vmatprep.subr.mxu1 %v1210_v21 }
 0x6fc   :  { %3529 = vmatpush3.msra.mxu1 %v1210_v21 }
 0x77a   :  { %v1067_v22 = vpop.xlane.xlu1 %1066 }
 0x77b   :  { %v1069_v24 = vmul.f32 0.03125, %v1067_v22  ;;  %v1209_v22 = vld [vmem:[%s4913_s1 + $0x3e8] sm:$0xff] }
 0x77c   :  { %v1064_v26 = vpop.xlane.xlu0 %1063  ;;  %3530 = vmatprep.subr.mxu1 %v1209_v22 }
 0x77d   :  { %v1071_v27 = vsub.f32 %v4422_v14, %v1069_v24  ;;  %v1068_v28 = vmul.f32 0.03125, %v1064_v26  ;;  %v1208_v24 = vld [vmem:[%s4913_s1 + $0x3e0] sm:$0xff]  ;;  %3531 = vmatpush3.msra.mxu1 %v1209_v22 }
 0x77e   :  { %3532 = vmatprep.subr.mxu1 %v1208_v24  ;;  %v3031_v26 = vld [vmem:[%s4914_s2 + $0x20] ss:$0 sm:$0xff] }
 0x77f   :  { %v1070_v6 = vsub.f32 %v4425_v18, %v1068_v28  ;;  %v1073_v29 = vmul.f32 %v1071_v27, %v1071_v27  ;;  %3533 = vmatpush3.msra.mxu1 %v1208_v24 }
 0x780   :  { %3589 = vmatprep.subr.mxu1 %v4244_v46 }
 0x781   :  { %v1077_v1 = vsel %vm370_vm0, %v1073_v29, 0.0  ;;  %v1072_v30 = vmul.f32 %v1070_v6, %v1070_v6 }
 0x782   :  { %1078 = vadd.xlane.f32.xlu1 %v1077_v1 }
 0x783   :  { %v1074_v31 = vsel %vm370_vm0, %v1072_v30, 0.0 }
 0x784   :  { %1075 = vadd.xlane.f32.xlu0 %v1074_v31 }
 0x80b   :  { %v1079_v36 = vpop.xlane.xlu1 %1078 }
 0x80c   :  { %v1081_v37 = vmul.f32 0.03125, %v1079_v36 }
 0x80d   :  { %v1076_v38 = vpop.xlane.xlu0 %1075 }
 0x80e   :  { %v1083_v39 = vadd.f32 1e-05, %v1081_v37  ;;  %v1080_v40 = vmul.f32 0.03125, %v1076_v38 }
 0x810   :  { %3760 = vrsqrt.f32 %v1083_v39  ;;  %v1082_v41 = vadd.f32 1e-05, %v1080_v40 }
 0x812   :  { %3762 = vrsqrt.f32 %v1082_v41 }
 0x81d   :  { %v3761_v42 = vpop.eup %3760 }
 0x81e   :  { %v1087_v44 = vmul.f32 %v3761_v42, %v1071_v27 }
 0x81f   :  { %v3763_v45 = vpop.eup %3762 }
 0x820   :  { %v1086_v54 = vmul.f32 %v3763_v45, %v1070_v6  ;;  %v1093_v55 = vmul.f32 %v3029_v43, %v1087_v44 }
 0x822   :  { %v1092_v57 = vmul.f32 %v3029_v43, %v1086_v54  ;;  %v1099_v59 = vadd.f32 %v3030_v56, %v1093_v55 }
 0x824   :  { %v1098_v58 = vadd.f32 %v3030_v56, %v1092_v57 }
 0x826   :  { %3499 = vmatprep.mubr.msk.f32.mxu0 %vm370_vm0, %v1098_v58 }
 0x827   :  { %3500 = vmatmul.mubr.msk.f32.vlgmr.msra.gmra.mxu0 %vm370_vm0, %v1099_v59 }
 0x828   :  { %3538 = vmatpush3.msra.mxu0 %v1351_v3 }
 0x829   :  { %3539 = vmatprep.subr.mxu0 %v1350_v4 }
 0x82a   :  { %3540 = vmatpush3.msra.mxu0 %v1350_v4 }
 0x82b   :  { %3541 = vmatprep.subr.mxu0 %v1349_v7 }
 0x82c   :  { %3542 = vmatpush3.msra.mxu0 %v1349_v7 }
 0x82d   :  { %3543 = vmatprep.subr.mxu0 %v1348_v8 }
 0x82e   :  { %3544 = vmatpush3.msra.mxu0 %v1348_v8 }
 0x82f   :  { %3548 = vmatprep.subr.mxu0 %v1441_v9 }
 0x8e7   :  { %v3501_v27 = vpop.f32.mrf.mxu0 }
 0x8e8   :  { %v1187_v28 = vadd.f32 %v3501_v27, %v3031_v26 }
 0x8e9   :  { %v1181_v6 = vpop.f32.mrf.mxu0 }
 0x8ea   :  { %v1191_v29 = vmul.f32 %v1187_v28, %v1187_v28  ;;  %v1182_v1 = vadd.f32 %v3031_v26, %v1181_v6  ;;  %v3035_v26 = vld [vmem:[%s4913_s1 + $0x468] ss:$0 sm:$0xff] }
 0x8ec   :  { %v1193_v30 = vmul.f32 %v1191_v29, %v1187_v28  ;;  %v1190_v31 = vmul.f32 %v1182_v1, %v1182_v1 }
 0x8ee   :  { %v1195_v32 = vmul.f32 0.044715, %v1193_v30  ;;  %v1192_v33 = vmul.f32 %v1190_v31, %v1182_v1 }
 0x8f0   :  { %v1197_v34 = vadd.f32 %v1195_v32, %v1187_v28  ;;  %v1194_v35 = vmul.f32 0.044715, %v1192_v33  ;;  %v1440_v33 = vld [vmem:[%s4913_s1 + $0x4b0] sm:$0xff] }
 0x8f2   :  { %v1199_v36 = vmul.f32 0.7978846, %v1197_v34  ;;  %v1196_v37 = vadd.f32 %v1194_v35, %v1182_v1  ;;  %v1439_v34 = vld [vmem:[%s4913_s1 + $0x4a8] sm:$0xff]  ;;  %v1438_v35 = vld [vmem:[%s4913_s1 + $0x4a0] sm:$0xff] }
 0x8f4   :  { %3764 = vtanh.f32 %v1199_v36  ;;  %v1198_v38 = vmul.f32 0.7978846, %v1196_v37  ;;  %v1525_v36 = vld [vmem:[%s4913_s1 + $0x4e0] sm:$0xff]  ;;  %v1524_v37 = vld [vmem:[%s4913_s1 + $0x4d8] sm:$0xff] }
 0x8f6   :  { %3766 = vtanh.f32 %v1198_v38  ;;  %v1523_v38 = vld [vmem:[%s4913_s1 + $0x4d0] sm:$0xff] }
 0x901   :  { %v3765_v39 = vpop.eup %3764 }
 0x902   :  { %v1203_v40 = vadd.f32 1.0, %v3765_v39  ;;  %v1522_v39 = vld [vmem:[%s4913_s1 + $0x4c8] sm:$0xff] }
 0x903   :  { %v3767_v41 = vpop.eup %3766 }
 0x904   :  { %v1202_v42 = vadd.f32 1.0, %v3767_v41  ;;  %v1205_v43 = vmul.f32 0.5, %v1203_v40  ;;  %v3037_v41 = vld [vmem:[%s4913_s1 + $0x498] ss:$0 sm:$0xff] }
 0x906   :  { %v1204_v44 = vmul.f32 0.5, %v1202_v42  ;;  %v1207_v54 = vmul.f32 %v1205_v43, %v1187_v28 }
 0x908   :  { %v1206_v45 = vmul.f32 %v1204_v44, %v1182_v1  ;;  %v3036_v1 = vld [vmem:[%s4913_s1 + $0x470] ss:$0 sm:$0xff]  ;;  %v3040_v44 = vld [vmem:[%s4913_s1 + $0x4c0] ss:$0 sm:$0xff] }
 0x90a   :  { %3534 = vmatprep.mubr.f32.mxu1 %v1206_v45 }
 0x90b   :  { %3535 = vmatmul.mubr.f32.vlgmr.msra.gmra.mxu1 %v1207_v54 }
 0x90c   :  { %3590 = vmatpush3.msra.mxu1 %v4244_v46 }
 0x90d   :  { %3591 = vmatprep.subr.mxu1 %v4251_v47 }
 0x90e   :  { %3592 = vmatpush3.msra.mxu1 %v4251_v47  ;;  %v3034_v47 = vld [vmem:[%s4913_s1 + $0x460] ss:$0 sm:$0xff] }
 0x90f   :  { %3593 = vmatprep.subr.mxu1 %v4258_v48 }
 0x910   :  { %3594 = vmatpush3.msra.mxu1 %v4258_v48 }
 0x911   :  { %3595 = vmatprep.subr.mxu1 %v4265_v49 }
 0x912   :  { %3596 = vmatpush3.msra.mxu1 %v4265_v49 }
 0x913   :  { %3597 = vmatprep.subr.mxu1 %v4272_v50 }
 0x914   :  { %3598 = vmatpush3.msra.mxu1 %v4272_v50 }
 0x915   :  { %3599 = vmatprep.subr.mxu1 %v4279_v51 }
 0x916   :  { %3600 = vmatpush3.msra.mxu1 %v4279_v51 }
 0x917   :  { %3601 = vmatprep.subr.mxu1 %v4286_v52 }
 0x918   :  { %3602 = vmatpush3.msra.mxu1 %v4286_v52 }
 0x919   :  { %3603 = vmatprep.subr.mxu1 %v4293_v53 }
 0x91a   :  { %3604 = vmatpush3.msra.mxu1 %v4293_v53 }
 0x9cb   :  { %v3536_v46 = vpop.f32.mrf.mxu1 }
 0x9cc   :  { %v1300_v48 = vadd.f32 %v3536_v46, %v4422_v14 }
 0x9cd   :  { %v1290_v49 = vpop.f32.mrf.mxu1 }
 0x9ce   :  { %v4526_v50 = vadd.f32 %v3034_v47, %v1300_v48  ;;  %v1299_v51 = vadd.f32 %v1290_v49, %v4425_v18 }
 0x9d0   :  { %v4529_v55 = vadd.f32 %v3034_v47, %v1299_v51  ;;  %v1313_v52 = vsel %vm370_vm0, %v4526_v50, 0.0  ;;  %v3043_v51 = vld [vmem:[%s4913_s1 + $0x4e8] ss:$0 sm:$0xff] }
 0x9d1   :  { %1314 = vadd.xlane.f32.xlu1 %v1313_v52 }
 0x9d2   :  { %v1310_v53 = vsel %vm370_vm0, %v4529_v55, 0.0 }
 0x9d3   :  { %1311 = vadd.xlane.f32.xlu0 %v1310_v53 }
 0xa5a   :  { %v1315_v56 = vpop.xlane.xlu1 %1314 }
 0xa5b   :  { %v1317_v57 = vmul.f32 0.03125, %v1315_v56 }
 0xa5c   :  { %v1312_v58 = vpop.xlane.xlu0 %1311 }
 0xa5d   :  { %v1319_v14 = vsub.f32 %v4526_v50, %v1317_v57  ;;  %v1316_v59 = vmul.f32 0.03125, %v1312_v58 }
 0xa5f   :  { %v1318_v61 = vsub.f32 %v4529_v55, %v1316_v59  ;;  %v1321_v62 = vmul.f32 %v1319_v14, %v1319_v14 }
 0xa61   :  { %v1325_v18 = vsel %vm370_vm0, %v1321_v62, 0.0  ;;  %v1320_v0 = vmul.f32 %v1318_v61, %v1318_v61 }
 0xa62   :  { %1326 = vadd.xlane.f32.xlu1 %v1325_v18 }
 0xa63   :  { %v1322_v2 = vsel %vm370_vm0, %v1320_v0, 0.0 }
 0xa64   :  { %1323 = vadd.xlane.f32.xlu0 %v1322_v2 }
 0xaeb   :  { %v1327_v11 = vpop.xlane.xlu1 %1326 }
 0xaec   :  { %v1329_v12 = vmul.f32 0.03125, %v1327_v11 }
 0xaed   :  { %v1324_v16 = vpop.xlane.xlu0 %1323 }
 0xaee   :  { %v1331_v20 = vadd.f32 1e-05, %v1329_v12  ;;  %v1328_v21 = vmul.f32 0.03125, %v1324_v16 }
 0xaf0   :  { %3768 = vrsqrt.f32 %v1331_v20  ;;  %v1330_v22 = vadd.f32 1e-05, %v1328_v21 }
 0xaf2   :  { %3770 = vrsqrt.f32 %v1330_v22 }
 0xafd   :  { %v3769_v24 = vpop.eup %3768 }
 0xafe   :  { %v1335_v27 = vmul.f32 %v3769_v24, %v1319_v14 }
 0xaff   :  { %v3771_v28 = vpop.eup %3770 }
 0xb00   :  { %v1334_v6 = vmul.f32 %v3771_v28, %v1318_v61  ;;  %v1341_v29 = vmul.f32 %v3035_v26, %v1335_v27 }
 0xb02   :  { %v1340_v30 = vmul.f32 %v3035_v26, %v1334_v6  ;;  %v1347_v32 = vadd.f32 %v3036_v1, %v1341_v29 }
 0xb04   :  { %v1346_v31 = vadd.f32 %v3036_v1, %v1340_v30 }
 0xb06   :  { %3545 = vmatprep.mubr.msk.f32.mxu0 %vm370_vm0, %v1346_v31 }
 0xb07   :  { %3546 = vmatmul.mubr.msk.f32.vlgmr.msra.gmra.mxu0 %vm370_vm0, %v1347_v32 }
 0xb08   :  { %3549 = vmatpush3.msra.mxu0 %v1441_v9  ;;  %3556 = vmatprep.mubr.msk.f32.mxu0 %vm370_vm0, %v1346_v31 }
 0xb09   :  { %3550 = vmatprep.subr.mxu0 %v1440_v33 }
 0xb0a   :  { %3551 = vmatpush3.msra.mxu0 %v1440_v33 }
 0xb0b   :  { %3552 = vmatprep.subr.mxu0 %v1439_v34 }
 0xb0c   :  { %3553 = vmatpush3.msra.mxu0 %v1439_v34 }
 0xb0d   :  { %3554 = vmatprep.subr.mxu0 %v1438_v35 }
 0xb0e   :  { %3555 = vmatpush3.msra.mxu0 %v1438_v35  ;;  %v3060_v35 = vld [vmem:[%s4913_s1 + $0x510] ss:$0 sm:$0xff] }
 0xb0f   :  { %3557 = vmatmul.mubr.msk.f32.vlgmr.msra.gmra.mxu0 %vm370_vm0, %v1347_v32  ;;  %3559 = vmatprep.subr.mxu0 %v1525_v36 }
 0xb10   :  { %3560 = vmatpush3.msra.mxu0 %v1525_v36  ;;  %3567 = vmatprep.mubr.msk.f32.mxu0 %vm370_vm0, %v1346_v31  ;;  %v1906_v31 = vld [vmem:[%s4913_s1 + $0x4f8] sm:$0xff] }
 0xb11   :  { %3561 = vmatprep.subr.mxu0 %v1524_v37 }
 0xb12   :  { %3562 = vmatpush3.msra.mxu0 %v1524_v37 }
 0xb13   :  { %3563 = vmatprep.subr.mxu0 %v1523_v38 }
 0xb14   :  { %3564 = vmatpush3.msra.mxu0 %v1523_v38 }
 0xb15   :  { %3565 = vmatprep.subr.mxu0 %v1522_v39 }
 0xb16   :  { %3566 = vmatpush3.msra.mxu0 %v1522_v39 }
 0xb17   :  { %3568 = vmatmul.mubr.msk.f32.vlgmr.msra.gmra.mxu0 %vm370_vm0, %v1347_v32  ;;  %v1905_v32 = vld [vmem:[%s4913_s1 + $0x4f0] sm:$0xff] }
 0xbc7   :  { %v3547_v40 = vpop.f32.mrf.mxu0 }
 0xbc8   :  { %v1435_v62 = vadd.f32 %v3547_v40, %v3037_v41 }
 0xbc9   :  { %v1429_v42 = vpop.f32.mrf.mxu0 }
 0xbca   :  { %v1430_v43 = vadd.f32 %v3037_v41, %v1429_v42 }
 0xbcc   :  { %3586 = vmatprep.mubr.msk.f32.mxu0 %vm370_vm0, %v1430_v43 }
 0xbcf   :  { %v3558_v45 = vpop.f32.mrf.mxu0 }
 0xbd0   :  { %v1519_v54 = vadd.f32 %v3558_v45, %v3040_v44 }
 0xbd1   :  { %v1513_v46 = vpop.f32.mrf.mxu0 }
 0xbd2   :  { %v1514_v47 = vadd.f32 %v3040_v44, %v1513_v46  ;;  %v1613_v48 = vmul.f32 %v1519_v54, %v4307_v60  ;;  %v1611_v56 = vmul.f32 %v1519_v54, %v4324_v5  ;;  %v1609_v14 = vmul.f32 %v1519_v54, %v4344_v13 }
 0xbd4   :  { %3570 = vmatprep.subr.msk.mxu0 %vm370_vm0, %v1613_v48  ;;  %v1612_v49 = vmul.f32 %v1514_v47, %v4312_v63  ;;  %v1610_v58 = vmul.f32 %v1514_v47, %v4334_v10  ;;  %v1608_v59 = vmul.f32 %v1514_v47, %v4352_v15  ;;  %v1606_v61 = vmul.f32 %v1514_v47, %v4368_v19 }
 0xbd5   :  { %3571 = vmatpush3.xpose.msk.msra.mxu0 %vm370_vm0, %v1613_v48 }
 0xbd6   :  { %3572 = vmatprep.subr.msk.mxu0 %vm370_vm0, %v1612_v49 }
 0xbd7   :  { %v3569_v52 = vpop.f32.mrf.mxu0 }
 0xbd8   :  { %v1603_v53 = vadd.f32 %v3569_v52, %v3043_v51  ;;  %v2040_v52 = vld [vmem:[%s4914_s2 + $0x40] sm:$0xff] }
 0xbd9   :  { %3573 = vmatpush3.xpose.msk.msra.mxu0 %vm370_vm0, %v1612_v49  ;;  %v1597_v18 = vpop.f32.mrf.mxu0 }
 0xbda   :  { %3574 = vmatprep.subr.msk.mxu0 %vm370_vm0, %v1611_v56  ;;  %v1621_v57 = vmul.f32 %v1603_v53, %v4307_v60  ;;  %v1607_v60 = vmul.f32 %v1519_v54, %v4360_v17  ;;  %v1598_v22 = vadd.f32 %v3043_v51, %v1597_v18  ;;  %v1619_v26 = vmul.f32 %v1603_v53, %v4324_v5 }
 0xbdb   :  { %v1617_v28 = vmul.f32 %v1603_v53, %v4344_v13  ;;  %v1907_v13 = vld [vmem:[%s4913_s1 + $0x500] sm:$0xff] }
 0xbdc   :  { %3608 = vmatprep.subr.mxu1 %v1621_v57  ;;  %v1618_v27 = vmul.f32 %v1598_v22, %v4334_v10  ;;  %v1616_v6 = vmul.f32 %v1598_v22, %v4352_v15  ;;  %v1614_v5 = vmul.f32 %v1598_v22, %v4368_v19  ;;  %v1908_v10 = vld [vmem:[%s4913_s1 + $0x508] sm:$0xff] }
 0xbdd   :  { %3575 = vmatpush3.xpose.msk.msra.mxu0 %vm370_vm0, %v1611_v56  ;;  %v2038_v56 = vld [vmem:[%s4914_s2 + $0x30] sm:$0xff] }
 0xbde   :  { %3576 = vmatprep.subr.msk.mxu0 %vm370_vm0, %v1610_v58 }
 0xbe1   :  { %3577 = vmatpush3.xpose.msk.msra.mxu0 %vm370_vm0, %v1610_v58 }
 0xbe2   :  { %3578 = vmatprep.subr.msk.mxu0 %vm370_vm0, %v1609_v14 }
 0xbe5   :  { %3579 = vmatpush3.xpose.msk.msra.mxu0 %vm370_vm0, %v1609_v14 }
 0xbe6   :  { %3580 = vmatprep.subr.msk.mxu0 %vm370_vm0, %v1608_v59 }
 0xbe9   :  { %3581 = vmatpush3.xpose.msk.msra.mxu0 %vm370_vm0, %v1608_v59 }
 0xbea   :  { %3582 = vmatprep.subr.msk.mxu0 %vm370_vm0, %v1607_v60 }
 0xbed   :  { %3583 = vmatpush3.xpose.msk.msra.mxu0 %vm370_vm0, %v1607_v60 }
 0xbee   :  { %3584 = vmatprep.subr.msk.mxu0 %vm370_vm0, %v1606_v61 }
 0xbf1   :  { %3585 = vmatpush3.xpose.msk.msra.mxu0 %vm370_vm0, %v1606_v61 }
 0xbf2   :  { %3627 = vmatprep.subr.mxu0 %v1908_v10 }
 0xbf4   :  { %3587 = vmatmul.mubr.msk.f32.vlgmr.msra.gmra.mxu0 %vm370_vm0, %v1435_v62 }
 0xbf5   :  { %3628 = vmatpush3.msra.mxu0 %v1908_v10  ;;  %v2147_v10 = vld [vmem:[%s4913_s1 + $0x538] sm:$0xff] }
 0xbf6   :  { %3629 = vmatprep.subr.mxu0 %v1907_v13 }
 0xbf7   :  { %3630 = vmatpush3.msra.mxu0 %v1907_v13  ;;  %v2146_v13 = vld [vmem:[%s4913_s1 + $0x530] sm:$0xff] }
 0xbf8   :  { %3631 = vmatprep.subr.mxu0 %v1906_v31 }
 0xbf9   :  { %3632 = vmatpush3.msra.mxu0 %v1906_v31 }
 0xbfa   :  { %3633 = vmatprep.subr.mxu0 %v1905_v32 }
 0xbfb   :  { %3634 = vmatpush3.msra.mxu0 %v1905_v32 }
 0xcb4   :  { %v3588_v0 = vpop.f32.mrf.mxu0 }
 0xcb5   :  { %v1724_v2 = vadd.f32 %v3588_v0, %v4379_v23  ;;  %v3063_v0 = vld [vmem:[%s4913_s1 + $0x518] ss:$0 sm:$0xff] }
 0xcb6   :  { %v1718_v3 = vpop.f32.mrf.mxu0 }
 0xcb7   :  { %v1719_v4 = vadd.f32 %v1718_v3, %v4384_v25  ;;  %v1730_v7 = vsel %vm789_vm1, %v1724_v2, -inf  ;;  %v1620_v25 = vmul.f32 %v1598_v22, %v4312_v63  ;;  %v1615_v63 = vmul.f32 %v1603_v53, %v4360_v17  ;;  %v2039_v53 = vld [vmem:[%s4914_s2 + $0x38] sm:$0xff]  ;;  %v2157_v22 = vld [vmem:[%s4913_s1 + $0x588] sm:$0xff] }
 0xcb8   :  { %1731 = vmax.xlane.f32.xlu1 %v1730_v7 }
 0xcb9   :  { %v1727_v8 = vsel %vm789_vm1, %v1719_v4, -inf }
 0xcba   :  { %1728 = vmax.xlane.f32.xlu0 %v1727_v8  ;;  %v3064_v8 = vld [vmem:[%s4913_s1 + $0x520] ss:$0 sm:$0xff] }
 0xd41   :  { %v1732_v9 = vpop.xlane.xlu1 %1731 }
 0xd42   :  { %v1734_v11 = vsub.f32 %v1724_v2, %v1732_v9 }
 0xd43   :  { %v1729_v12 = vpop.xlane.xlu0 %1728 }
 0xd44   :  { %v1733_v16 = vsub.f32 %v1719_v4, %v1729_v12  ;;  %v1737_v20 = vmul.f32 1.442695, %v1734_v11 }
 0xd46   :  { %v1735_v21 = vmul.f32 1.442695, %v1733_v16  ;;  %v2160_v16 = vld [vmem:[%s4913_s1 + $0x5a0] sm:$0xff] }
 0xd47   :  { %3649 = vmatprep.subr.mxu0 %v2160_v16 }
 0xd48   :  { %3772 = vpow2.f32 %v1735_v21  ;;  %v2158_v21 = vld [vmem:[%s4913_s1 + $0x590] sm:$0xff] }
 0xd49   :  { %3774 = vpow2.f32 %v1737_v20  ;;  %v2159_v20 = vld [vmem:[%s4913_s1 + $0x598] sm:$0xff] }
 0xd55   :  { %v3773_v24 = vpop.eup %3772 }
 0xd56   :  { %v3775_v23 = vpop.eup %3774  ;;  %3605 = vmatprep.mubr.msk.f32.mxu1 %vm789_vm1, %v3773_v24 }
 0xd57   :  { %3606 = vmatmul.mubr.msk.f32.vlgmr.msra.gmra.mxu1 %vm789_vm1, %v3775_v23 }
 0xd58   :  { %3609 = vmatpush3.msra.mxu1 %v1621_v57  ;;  %v2037_v57 = vld [vmem:[%s4914_s2 + $0x28] sm:$0xff] }
 0xd59   :  { %3610 = vmatprep.subr.mxu1 %v1620_v25 }
 0xd5a   :  { %3611 = vmatpush3.msra.mxu1 %v1620_v25  ;;  %v2154_v25 = vld [vmem:[%s4913_s1 + $0x570] sm:$0xff] }
 0xd5b   :  { %3612 = vmatprep.subr.mxu1 %v1619_v26 }
 0xd5c   :  { %3613 = vmatpush3.msra.mxu1 %v1619_v26  ;;  %v2153_v26 = vld [vmem:[%s4913_s1 + $0x568] sm:$0xff] }
 0xd5d   :  { %3614 = vmatprep.subr.mxu1 %v1618_v27 }
 0xd5e   :  { %3615 = vmatpush3.msra.mxu1 %v1618_v27  ;;  %v2152_v27 = vld [vmem:[%s4913_s1 + $0x560] sm:$0xff] }
 0xd5f   :  { %3616 = vmatprep.subr.mxu1 %v1617_v28 }
 0xd60   :  { %3617 = vmatpush3.msra.mxu1 %v1617_v28  ;;  %v2151_v28 = vld [vmem:[%s4913_s1 + $0x558] sm:$0xff] }
 0xd61   :  { %3618 = vmatprep.subr.mxu1 %v1616_v6 }
 0xd62   :  { %3619 = vmatpush3.msra.mxu1 %v1616_v6  ;;  %v2150_v6 = vld [vmem:[%s4913_s1 + $0x550] sm:$0xff] }
 0xd63   :  { %3620 = vmatprep.subr.mxu1 %v1615_v63 }
 0xd64   :  { %3621 = vmatpush3.msra.mxu1 %v1615_v63  ;;  %v2149_v63 = vld [vmem:[%s4913_s1 + $0x548] sm:$0xff] }
 0xd65   :  { %3622 = vmatprep.subr.mxu1 %v1614_v5 }
 0xd66   :  { %3623 = vmatpush3.msra.mxu1 %v1614_v5  ;;  %v2148_v5 = vld [vmem:[%s4913_s1 + $0x540] sm:$0xff] }
 0xd67   :  { %3638 = vmatprep.subr.mxu1 %v2040_v52 }
 0xe17   :  { %v3607_v15 = vpop.f32.mrf.mxu1 }
 0xe18   :  { %3776 = vrcp.f32 %v3607_v15  ;;  %v2145_v15 = vld [vmem:[%s4913_s1 + $0x528] sm:$0xff] }
 0xe19   :  { %v1811_v17 = vpop.f32.mrf.mxu1 }
 0xe1a   :  { %3778 = vrcp.f32 %v1811_v17  ;;  %v3065_v17 = vld [vmem:[%s4914_s2 + $0x48] ss:$0 sm:$0xff] }
 0xe25   :  { %v3777_v19 = vpop.eup %3776 }
 0xe26   :  { %v1823_v30 = vmul.f32 %v3777_v19, %v3775_v23  ;;  %v2155_v23 = vld [vmem:[%s4913_s1 + $0x578] sm:$0xff] }
 0xe27   :  { %v3779_v29 = vpop.eup %3778 }
 0xe28   :  { %v1821_v1 = vmul.f32 %v3779_v29, %v3773_v24  ;;  %v2156_v24 = vld [vmem:[%s4913_s1 + $0x580] sm:$0xff] }
 0xe2a   :  { %3624 = vmatprep.mubr.msk.f32.mxu1 %vm789_vm1, %v1821_v1 }
 0xe2b   :  { %3625 = vmatmul.mubr.msk.f32.vlgmr.msra.gmra.mxu1 %vm789_vm1, %v1823_v30 }
 0xe2c   :  { %3639 = vmatpush3.msra.mxu1 %v2040_v52 }
 0xe2d   :  { %3640 = vmatprep.subr.mxu1 %v2039_v53 }
 0xe2e   :  { %3641 = vmatpush3.msra.mxu1 %v2039_v53 }
 0xe2f   :  { %3642 = vmatprep.subr.mxu1 %v2038_v56 }
 0xe30   :  { %3643 = vmatpush3.msra.mxu1 %v2038_v56 }
 0xe31   :  { %3644 = vmatprep.subr.mxu1 %v2037_v57 }
 0xe32   :  { %3645 = vmatpush3.msra.mxu1 %v2037_v57 }
 0xeeb   :  { %v3626_v33 = vpop.f32.mrf.mxu1 }
 0xeed   :  { %v1896_v34 = vpop.f32.mrf.mxu1 }
 0xeee   :  { %3635 = vmatprep.mubr.msk.f32.mxu0 %vm370_vm0, %v1896_v34 }
 0xeef   :  { %3636 = vmatmul.mubr.msk.f32.vlgmr.msra.gmra.mxu0 %vm370_vm0, %v3626_v33 }
 0xef0   :  { %3650 = vmatpush3.msra.mxu0 %v2160_v16 }
 0xef1   :  { %3651 = vmatprep.subr.mxu0 %v2159_v20 }
 0xef2   :  { %3652 = vmatpush3.msra.mxu0 %v2159_v20 }
 0xef3   :  { %3653 = vmatprep.subr.mxu0 %v2158_v21 }
 0xef4   :  { %3654 = vmatpush3.msra.mxu0 %v2158_v21  ;;  %v3069_v21 = vld [vmem:[%s4913_s1 + $0x310] ss:$0 sm:$0xff] }
 0xef5   :  { %3655 = vmatprep.subr.mxu0 %v2157_v22 }
 0xef6   :  { %3656 = vmatpush3.msra.mxu0 %v2157_v22 }
 0xef7   :  { %3657 = vmatprep.subr.mxu0 %v2156_v24 }
 0xef8   :  { %3658 = vmatpush3.msra.mxu0 %v2156_v24 }
 0xef9   :  { %3659 = vmatprep.subr.mxu0 %v2155_v23 }
 0xefa   :  { %3660 = vmatpush3.msra.mxu0 %v2155_v23  ;;  %v3070_v23 = vld [vmem:[%s4913_s1 + $0x318] ss:$0 sm:$0xff] }
 0xefb   :  { %3661 = vmatprep.subr.mxu0 %v2154_v25 }
 0xefc   :  { %3662 = vmatpush3.msra.mxu0 %v2154_v25 }
 0xefd   :  { %3663 = vmatprep.subr.mxu0 %v2153_v26 }
 0xefe   :  { %3664 = vmatpush3.msra.mxu0 %v2153_v26 }
 0xeff   :  { %3665 = vmatprep.subr.mxu0 %v2152_v27 }
 0xf00   :  { %3666 = vmatpush3.msra.mxu0 %v2152_v27 }
 0xf01   :  { %3667 = vmatprep.subr.mxu0 %v2151_v28 }
 0xf02   :  { %3668 = vmatpush3.msra.mxu0 %v2151_v28 }
 0xf03   :  { %3669 = vmatprep.subr.mxu0 %v2150_v6 }
 0xf04   :  { %3670 = vmatpush3.msra.mxu0 %v2150_v6 }
 0xf05   :  { %3671 = vmatprep.subr.mxu0 %v2149_v63 }
 0xf06   :  { %3672 = vmatpush3.msra.mxu0 %v2149_v63  ;;  %v2285_v63 = vld [vmem:[%s4913_s1 + $0x6d8] sm:$0x3] }
 0xf07   :  { %3673 = vmatprep.subr.mxu0 %v2148_v5 }
 0xf08   :  { %3674 = vmatpush3.msra.mxu0 %v2148_v5  ;;  %v2559_v5 = vld [vmem:[%s4913_s1 + $0x650] sm:$0xff] }
 0xf09   :  { %3675 = vmatprep.subr.mxu0 %v2147_v10 }
 0xf0a   :  { %3676 = vmatpush3.msra.mxu0 %v2147_v10 }
 0xf0b   :  { %3677 = vmatprep.subr.mxu0 %v2146_v13 }
 0xf0c   :  { %3678 = vmatpush3.msra.mxu0 %v2146_v13 }
 0xf0d   :  { %3679 = vmatprep.subr.mxu0 %v2145_v15 }
 0xf0e   :  { %3680 = vmatpush3.msra.mxu0 %v2145_v15 }
 0xfaf   :  { %v3637_v36 = vpop.f32.mrf.mxu0 }
 0xfb0   :  { %v1992_v37 = vadd.f32 %v3637_v36, %v3060_v35 }
 0xfb1   :  { %v1986_v38 = vpop.f32.mrf.mxu0 }
 0xfb2   :  { %v4656_v39 = vadd.f32 %v1992_v37, %v4526_v50  ;;  %v1987_v40 = vadd.f32 %v3060_v35, %v1986_v38 }
 0xfb4   :  { %v4659_v41 = vadd.f32 %v1987_v40, %v4529_v55  ;;  %v2002_v42 = vsel %vm370_vm0, %v4656_v39, 0.0 }
 0xfb5   :  { %2003 = vadd.xlane.f32.xlu1 %v2002_v42 }
 0xfb6   :  { %v1999_v43 = vsel %vm370_vm0, %v4659_v41, 0.0 }
 0xfb7   :  { %2000 = vadd.xlane.f32.xlu0 %v1999_v43 }
0x103e   :  { %v2004_v44 = vpop.xlane.xlu1 %2003 }
0x103f   :  { %v2006_v45 = vmul.f32 0.03125, %v2004_v44 }
0x1040   :  { %v2001_v54 = vpop.xlane.xlu0 %2000 }
0x1041   :  { %v2008_v46 = vsub.f32 %v4656_v39, %v2006_v45  ;;  %v2005_v47 = vmul.f32 0.03125, %v2001_v54 }
0x1043   :  { %v2007_v50 = vsub.f32 %v4659_v41, %v2005_v47  ;;  %v2010_v48 = vmul.f32 %v2008_v46, %v2008_v46 }
0x1045   :  { %v2014_v55 = vsel %vm370_vm0, %v2010_v48, 0.0  ;;  %v2009_v49 = vmul.f32 %v2007_v50, %v2007_v50 }
0x1046   :  { %2015 = vadd.xlane.f32.xlu1 %v2014_v55 }
0x1047   :  { %v2011_v51 = vsel %vm370_vm0, %v2009_v49, 0.0  ;;  %v3068_v49 = vld [vmem:[%s4913_s1 + $0x5a8] ss:$0 sm:$0xff] }
0x1048   :  { %2012 = vadd.xlane.f32.xlu0 %v2011_v51 }
0x10cf   :  { %v2016_v58 = vpop.xlane.xlu1 %2015 }
0x10d0   :  { %v2018_v14 = vmul.f32 0.03125, %v2016_v58 }
0x10d1   :  { %v2013_v59 = vpop.xlane.xlu0 %2012 }
0x10d2   :  { %v2020_v60 = vadd.f32 1e-05, %v2018_v14  ;;  %v2017_v61 = vmul.f32 0.03125, %v2013_v59 }
0x10d4   :  { %3780 = vrsqrt.f32 %v2020_v60  ;;  %v2019_v62 = vadd.f32 1e-05, %v2017_v61 }
0x10d6   :  { %3782 = vrsqrt.f32 %v2019_v62 }
0x10e1   :  { %v3781_v18 = vpop.eup %3780 }
0x10e2   :  { %v2024_v2 = vmul.f32 %v3781_v18, %v2008_v46 }
0x10e3   :  { %v3783_v3 = vpop.eup %3782 }
0x10e4   :  { %v2023_v4 = vmul.f32 %v3783_v3, %v2007_v50  ;;  %v2030_v7 = vmul.f32 %v3063_v0, %v2024_v2 }
0x10e6   :  { %v2029_v9 = vmul.f32 %v3063_v0, %v2023_v4  ;;  %v2036_v12 = vadd.f32 %v3064_v8, %v2030_v7  ;;  %v3828_v4 = vmov 0.0  }
0x10e7   :  { %3684 = vmatprep.subr.mxu1 %v3828_v4  ;;  %3734 = vmatprep.subr.mxu0 %v3828_v4 }
0x10e8   :  { %v2035_v11 = vadd.f32 %v3064_v8, %v2029_v9 }
0x10ea   :  { %3646 = vmatprep.mubr.msk.f32.mxu1 %vm370_vm0, %v2035_v11 }
0x10eb   :  { %3647 = vmatmul.mubr.msk.f32.vlgmr.msra.gmra.mxu1 %vm370_vm0, %v2036_v12 }
0x10ec   :  { %3688 = vmatprep.mubr.msk.f32.mxu1 %vm3829_vm2, %v3828_v4 }
0x11ab   :  { %v3648_v19 = vpop.f32.mrf.mxu1 }
0x11ac   :  { %v2124_v29 = vadd.f32 %v3648_v19, %v3065_v17 }
0x11ad   :  { %v2118_v1 = vpop.f32.mrf.mxu1 }
0x11ae   :  { %v2128_v30 = vmul.f32 %v2124_v29, %v2124_v29  ;;  %v2119_v31 = vadd.f32 %v3065_v17, %v2118_v1 }
0x11b0   :  { %v2130_v32 = vmul.f32 %v2128_v30, %v2124_v29  ;;  %v2127_v33 = vmul.f32 %v2119_v31, %v2119_v31 }
0x11b2   :  { %v2132_v34 = vmul.f32 0.044715, %v2130_v32  ;;  %v2129_v35 = vmul.f32 %v2127_v33, %v2119_v31  ;;  %v2560_v32 = vld [vmem:[%s4913_s1 + $0x658] sm:$0xff] }
0x11b4   :  { %v2134_v36 = vadd.f32 %v2132_v34, %v2124_v29  ;;  %v2131_v37 = vmul.f32 0.044715, %v2129_v35 }
0x11b6   :  { %v2136_v38 = vmul.f32 0.7978846, %v2134_v36  ;;  %v2133_v40 = vadd.f32 %v2131_v37, %v2119_v31 }
0x11b8   :  { %3784 = vtanh.f32 %v2136_v38  ;;  %v2135_v42 = vmul.f32 0.7978846, %v2133_v40 }
0x11ba   :  { %3786 = vtanh.f32 %v2135_v42 }
0x11c5   :  { %v3785_v43 = vpop.eup %3784 }
0x11c6   :  { %v2140_v44 = vadd.f32 1.0, %v3785_v43  ;;  %v2389_v43 = vld [vmem:[%s4913_s1 + $0x5d8] sm:$0xff] }
0x11c7   :  { %v3787_v45 = vpop.eup %3786 }
0x11c8   :  { %v2139_v54 = vadd.f32 1.0, %v3787_v45  ;;  %v2142_v46 = vmul.f32 0.5, %v2140_v44  ;;  %v2388_v44 = vld [vmem:[%s4913_s1 + $0x5d0] sm:$0xff]  ;;  %v2387_v45 = vld [vmem:[%s4913_s1 + $0x5c8] sm:$0xff] }
0x11ca   :  { %v2141_v47 = vmul.f32 0.5, %v2139_v54  ;;  %v2144_v48 = vmul.f32 %v2142_v46, %v2124_v29  ;;  %v2386_v54 = vld [vmem:[%s4913_s1 + $0x5c0] sm:$0xff] }
0x11cc   :  { %v2143_v50 = vmul.f32 %v2141_v47, %v2119_v31 }
0x11ce   :  { %3681 = vmatprep.mubr.f32.mxu0 %v2143_v50 }
0x11cf   :  { %3682 = vmatmul.mubr.f32.vlgmr.msra.gmra.mxu0 %v2144_v48 }
0x11d0   :  { %3742 = vmatprep.mubr.msk.f32.mxu0 %vm3829_vm2, %v3828_v4 }
0x128f   :  { %v3683_v55 = vpop.f32.mrf.mxu0 }
0x1290   :  { %v2237_v51 = vadd.f32 %v3683_v55, %v4656_v39 }
0x1291   :  { %v2227_v52 = vpop.f32.mrf.mxu0 }
0x1292   :  { %v2236_v53 = vadd.f32 %v2227_v52, %v4659_v41  ;;  %v2244_v56 = vadd.f32 %v3068_v49, %v2237_v51 }
0x1294   :  { %v2250_v57 = vsel %vm370_vm0, %v2244_v56, 0.0  ;;  %v2243_v58 = vadd.f32 %v3068_v49, %v2236_v53 }
0x1295   :  { %2251 = vadd.xlane.f32.xlu0 %v2250_v57 }
0x1296   :  { %v2247_v14 = vsel %vm370_vm0, %v2243_v58, 0.0 }
0x1297   :  { %2248 = vadd.xlane.f32.xlu1 %v2247_v14 }
0x131e   :  { %v2252_v59 = vpop.xlane.xlu0 %2251 }
0x131f   :  { %v2254_v60 = vmul.f32 0.03125, %v2252_v59 }
0x1320   :  { %v2249_v61 = vpop.xlane.xlu1 %2248 }
0x1321   :  { %v2256_v62 = vsub.f32 %v2244_v56, %v2254_v60  ;;  %v2253_v18 = vmul.f32 0.03125, %v2249_v61  ;;  %v3072_v56 = vld [vmem:[%s4913_s1 + $0x5b0] ss:$0 sm:$0xff]  ;;  %v2477_v61 = vld [vmem:[%s4913_s1 + $0x5e8] sm:$0xff] }
0x1322   :  { %v2478_v60 = vld [vmem:[%s4913_s1 + $0x5f0] sm:$0xff] }
0x1323   :  { %v2255_v0 = vsub.f32 %v2243_v58, %v2253_v18  ;;  %v2258_v2 = vmul.f32 %v2256_v62, %v2256_v62  ;;  %v3073_v58 = vld [vmem:[%s4913_s1 + $0x5b8] ss:$0 sm:$0xff] }
0x1325   :  { %v2262_v39 = vsel %vm370_vm0, %v2258_v2, 0.0  ;;  %v2257_v3 = vmul.f32 %v2255_v0, %v2255_v0 }
0x1326   :  { %2263 = vadd.xlane.f32.xlu0 %v2262_v39 }
0x1327   :  { %v2259_v41 = vsel %vm370_vm0, %v2257_v3, 0.0 }
0x1328   :  { %2260 = vadd.xlane.f32.xlu1 %v2259_v41 }
0x13af   :  { %v2264_v7 = vpop.xlane.xlu0 %2263 }
0x13b0   :  { %v2266_v8 = vmul.f32 0.03125, %v2264_v7 }
0x13b1   :  { %v2261_v9 = vpop.xlane.xlu1 %2260 }
0x13b2   :  { %v2268_v11 = vadd.f32 1e-05, %v2266_v8  ;;  %v2265_v12 = vmul.f32 0.03125, %v2261_v9 }
0x13b4   :  { %3788 = vrsqrt.f32 %v2268_v11  ;;  %v2267_v16 = vadd.f32 1e-05, %v2265_v12 }
0x13b6   :  { %3790 = vrsqrt.f32 %v2267_v16 }
0x13c1   :  { %v3789_v20 = vpop.eup %3788 }
0x13c2   :  { %v2272_v22 = vmul.f32 %v3789_v20, %v2256_v62  ;;  %v2606_v62 = vld [vmem:[%s4913_s1 + $0x628] sm:$0xff] }
0x13c3   :  { %v3791_v24 = vpop.eup %3790 }
0x13c4   :  { %v2278_v25 = vmul.f32 %v3069_v21, %v2272_v22  ;;  %v2271_v26 = vmul.f32 %v3791_v24, %v2255_v0  ;;  %v3074_v0 = vld [vmem:[%s4913_s1 + $0x5e0] ss:$0 sm:$0xff] }
0x13c6   :  { %v2284_v27 = vadd.f32 %v3070_v23, %v2278_v25  ;;  %v2277_v28 = vmul.f32 %v3069_v21, %v2271_v26  ;;  %v3078_v25 = vld [vmem:[%s4913_s1 + $0x600] ss:$0 sm:$0xff] }
0x13c8   :  { %3685 = vmatpush3.msra.mxu1 %v2284_v27  ;;  %v2283_v6 = vadd.f32 %v3070_v23, %v2277_v28  ;;  %v4788_v37 = vadd.f32 %v2560_v32, %v2284_v27 }
0x13c9   :  { %3686 = vmatprep.subr.mxu1 %v3828_v4 }
0x13ca   :  { %3687 = vmatpush3.msra.mxu1 %v2283_v6  ;;  %v4776_v15 = vadd.f32 %v2559_v5, %v2283_v6  ;;  %v2568_v40 = vsel %vm370_vm0, %v4788_v37, 0.0  ;;  %v3079_v5 = vld [vmem:[%s4913_s1 + $0x608] ss:$0 sm:$0xff] }
0x13cb   :  { %3689 = vmatmul.mubr.msk.f32.vlgmr.msra.gmra.mxu1 %vm2286_vm3, %v2285_v63  ;;  %3691 = vmatprep.subr.mxu1 %v3828_v4 }
0x13cc   :  { %3699 = vmatprep.mubr.msk.f32.mxu1 %vm3829_vm2, %v3828_v4  ;;  %v2565_v19 = vsel %vm370_vm0, %v4776_v15, 0.0  ;;  %3692 = vmatpush3.msra.mxu1 %v2389_v43 }
0x13cd   :  { %3693 = vmatprep.subr.mxu1 %v3828_v4 }
0x13ce   :  { %3694 = vmatpush3.msra.mxu1 %v2388_v44 }
0x13cf   :  { %3695 = vmatprep.subr.mxu1 %v3828_v4 }
0x13d0   :  { %3696 = vmatpush3.msra.mxu1 %v2387_v45 }
0x13d1   :  { %3697 = vmatprep.subr.mxu1 %v3828_v4 }
0x13d2   :  { %3698 = vmatpush3.msra.mxu1 %v2386_v54 }
0x13d3   :  { %3702 = vmatprep.subr.mxu1 %v3828_v4 }
0x148b   :  { %v4772_v10 = vpop.f32.mrf.mxu1 }
0x148c   :  { %v2363_v13 = vsel %vm2362_vm4, %v4772_v10, 0.0 }
0x148d   :  { %2364 = vadd.xlane.f32.xlu0 %v2363_v13  ;;  %v3690_v17 = vpop.f32.mrf.mxu1 }
0x1491   :  { %2566 = vadd.xlane.f32.xlu0 %v2565_v19  ;;  %v2605_v19 = vld [vmem:[%s4913_s1 + $0x620] sm:$0xff] }
0x1516   :  { %v2365_v29 = vpop.xlane.xlu0 %2364 }
0x1517   :  { %v2366_v1 = vmul.f32 0.03125, %v2365_v29 }
0x1519   :  { %v2367_v30 = vsub.f32 %v4772_v10, %v2366_v1  ;;  %v2604_v1 = vld [vmem:[%s4913_s1 + $0x618] sm:$0xff] }
0x151a   :  { %v2567_v31 = vpop.xlane.xlu0 %2566 }
0x151b   :  { %v2571_v33 = vmul.f32 0.03125, %v2567_v31  ;;  %v2368_v34 = vmul.f32 %v2367_v30, %v2367_v30  ;;  %v2603_v31 = vld [vmem:[%s4913_s1 + $0x610] sm:$0xff] }
0x151d   :  { %v4785_v35 = vsub.f32 %v4776_v15, %v2571_v33  ;;  %v2369_v36 = vsel %vm2362_vm4, %v2368_v34, 0.0  ;;  %v2712_v33 = vld [vmem:[%s4913_s1 + $0x640] sm:$0xff]  ;;  %v2711_v34 = vld [vmem:[%s4913_s1 + $0x638] sm:$0xff] }
0x151e   :  { %2370 = vadd.xlane.f32.xlu1 %v2369_v36 }
0x151f   :  { %v2575_v38 = vmul.f32 %v4785_v35, %v4785_v35 }
0x1521   :  { %v2577_v42 = vsel %vm370_vm0, %v2575_v38, 0.0  ;;  %v3080_v38 = vld [vmem:[%s4913_s1 + $0x630] ss:$0 sm:$0xff] }
0x1522   :  { %2569 = vadd.xlane.f32.xlu1 %v2568_v40  ;;  %2578 = vadd.xlane.f32.xlu0 %v2577_v42 }
0x15a7   :  { %v2371_v46 = vpop.xlane.xlu1 %2370 }
0x15a8   :  { %v2372_v47 = vmul.f32 0.03125, %v2371_v46 }
0x15aa   :  { %v2373_v50 = vadd.f32 1e-05, %v2372_v47 }
0x15ab   :  { %v2570_v48 = vpop.xlane.xlu1 %2569  ;;  %v2579_v18 = vpop.xlane.xlu0 %2578 }
0x15ac   :  { %3792 = vrsqrt.f32 %v2373_v50  ;;  %v2572_v55 = vmul.f32 0.03125, %v2570_v48  ;;  %v2583_v2 = vmul.f32 0.03125, %v2579_v18  ;;  %v3085_v18 = vld [vmem:[%s4913_s1 + $0x648] ss:$0 sm:$0xff] }
0x15ae   :  { %v2574_v49 = vsub.f32 %v4788_v37, %v2572_v55  ;;  %v2585_v8 = vadd.f32 1e-05, %v2583_v2 }
0x15b0   :  { %v2576_v51 = vmul.f32 %v2574_v49, %v2574_v49  ;;  %3794 = vrsqrt.f32 %v2585_v8 }
0x15b2   :  { %v2580_v52 = vsel %vm370_vm0, %v2576_v51, 0.0 }
0x15b3   :  { %2581 = vadd.xlane.f32.xlu1 %v2580_v52 }
0x15b9   :  { %v3793_v53 = vpop.eup %3792 }
0x15ba   :  { %v2375_v57 = vmul.f32 %v3793_v53, %v2367_v30 }
0x15bc   :  { %v2380_v14 = vmul.f32 %v3072_v56, %v2375_v57 }
0x15bd   :  { %v3795_v24 = vpop.eup %3794 }
0x15be   :  { %v2385_v59 = vadd.f32 %v3073_v58, %v2380_v14  ;;  %v2589_v23 = vmul.f32 %v3795_v24, %v4785_v35 }
0x15c0   :  { %3700 = vmatmul.mubr.msk.f32.vlgmr.msra.gmra.mxu1 %vm370_vm0, %v2385_v59  ;;  %v2595_v6 = vmul.f32 %v3078_v25, %v2589_v23 }
0x15c1   :  { %3706 = vmatprep.mubr.msk.f32.mxu1 %vm3829_vm2, %v3828_v4  ;;  %3703 = vmatpush3.msra.mxu1 %v2478_v60 }
0x15c2   :  { %3704 = vmatprep.subr.mxu1 %v3828_v4  ;;  %v2601_v29 = vadd.f32 %v3079_v5, %v2595_v6 }
0x15c3   :  { %3705 = vmatpush3.msra.mxu1 %v2477_v61 }
0x15c4   :  { %3709 = vmatprep.subr.mxu1 %v2606_v62 }
0x163c   :  { %v2582_v9 = vpop.xlane.xlu1 %2581 }
0x163d   :  { %v2584_v12 = vmul.f32 0.03125, %v2582_v9 }
0x163f   :  { %v2586_v21 = vadd.f32 1e-05, %v2584_v12 }
0x1680   :  { %v2464_v39 = vpop.f32.mrf.mxu1 }
0x1681   :  { %v2465_v3 = vadd.f32 %v3074_v0, %v2464_v39 }
0x1682   :  { %v3701_v41 = vpop.f32.mrf.mxu1 }
0x1683   :  { %v2468_v7 = vmul.f32 %v2465_v3, %v2465_v3 }
0x1685   :  { %v2469_v11 = vmul.f32 %v2468_v7, %v2465_v3  ;;  %v2803_v7 = vld [vmem:[%s4913_s1 + $0x6e0] sm:$0x3] }
0x1687   :  { %v2470_v16 = vmul.f32 0.044715, %v2469_v11 }
0x1689   :  { %v2471_v20 = vadd.f32 %v2470_v16, %v2465_v3 }
0x168b   :  { %v2472_v22 = vmul.f32 0.7978846, %v2471_v20 }
0x168d   :  { %3796 = vtanh.f32 %v2472_v22 }
0x168e   :  { %3798 = vrsqrt.f32 %v2586_v21 }
0x169a   :  { %v3797_v26 = vpop.eup %3796 }
0x169b   :  { %v2474_v27 = vadd.f32 1.0, %v3797_v26  ;;  %v3799_v28 = vpop.eup %3798  ;;  %v2904_v26 = vld [vmem:[%s4913_s1 + $0x678] sm:$0xff] }
0x169c   :  { %v2590_v17 = vmul.f32 %v3799_v28, %v2574_v49 }
0x169d   :  { %v2475_v63 = vmul.f32 0.5, %v2474_v27  ;;  %v2903_v27 = vld [vmem:[%s4913_s1 + $0x670] sm:$0xff] }
0x169e   :  { %v2596_v30 = vmul.f32 %v3078_v25, %v2590_v17  ;;  %v2905_v25 = vld [vmem:[%s4913_s1 + $0x680] sm:$0xff] }
0x169f   :  { %v2476_v13 = vmul.f32 %v2475_v63, %v2465_v3 }
0x16a0   :  { %v2602_v32 = vadd.f32 %v3079_v5, %v2596_v30 }
0x16a1   :  { %3707 = vmatmul.mubr.msk.f32.vlgmr.msra.gmra.mxu1 %vm2286_vm3, %v2476_v13  ;;  %v3087_v13 = vld [vmem:[%s4913_s1 + $0x660] ss:$0 sm:$0xff] }
0x16a2   :  { %3710 = vmatpush3.msra.mxu1 %v2606_v62  ;;  %3717 = vmatprep.mubr.msk.f32.mxu1 %vm370_vm0, %v2601_v29 }
0x16a3   :  { %3711 = vmatprep.subr.mxu1 %v2605_v19 }
0x16a4   :  { %3712 = vmatpush3.msra.mxu1 %v2605_v19  ;;  %v3088_v19 = vld [vmem:[%s4913_s1 + $0x668] ss:$0 sm:$0xff] }
0x16a5   :  { %3713 = vmatprep.subr.mxu1 %v2604_v1 }
0x16a6   :  { %3714 = vmatpush3.msra.mxu1 %v2604_v1 }
0x16a7   :  { %3715 = vmatprep.subr.mxu1 %v2603_v31 }
0x16a8   :  { %3716 = vmatpush3.msra.mxu1 %v2603_v31 }
0x16a9   :  { %3718 = vmatmul.mubr.msk.f32.vlgmr.msra.gmra.mxu1 %vm370_vm0, %v2602_v32  ;;  %3720 = vmatprep.subr.mxu1 %v2712_v33 }
0x16aa   :  { %3721 = vmatpush3.msra.mxu1 %v2712_v33 }
0x16ab   :  { %3722 = vmatprep.subr.mxu1 %v2711_v34 }
0x16ac   :  { %3723 = vmatpush3.msra.mxu1 %v2711_v34 }
0x16ad   :  { %3727 = vmatprep.subr.mxu1 %v3828_v4 }
0x1761   :  { %v2548_v35 = vpop.f32.mrf.mxu1 }
0x1762   :  { %v2552_v8 = vadd.f32 %v2548_v35, %v4772_v10  ;;  %v2906_v10 = vld [vmem:[%s4913_s1 + $0x688] sm:$0xff] }
0x1763   :  { %v3708_v36 = vpop.f32.mrf.mxu1  ;;  %3735 = vmatpush3.msra.mxu0 %v2906_v10 }
0x1764   :  { %3736 = vmatprep.subr.mxu0 %v3828_v4 }
0x1765   :  { %3737 = vmatpush3.msra.mxu0 %v2905_v25 }
0x1766   :  { %3738 = vmatprep.subr.mxu0 %v3828_v4 }
0x1767   :  { %3739 = vmatpush3.msra.mxu0 %v2904_v26 }
0x1768   :  { %3740 = vmatprep.subr.mxu0 %v3828_v4 }
0x1769   :  { %v3719_v40 = vpop.f32.mrf.mxu1  ;;  %3741 = vmatpush3.msra.mxu0 %v2903_v27 }
0x176a   :  { %v2690_v42 = vadd.f32 %v3719_v40, %v3080_v38 }
0x176b   :  { %v2684_v43 = vpop.f32.mrf.mxu1 }
0x176c   :  { %v2694_v44 = vmul.f32 %v2690_v42, %v2690_v42  ;;  %v2685_v45 = vadd.f32 %v3080_v38, %v2684_v43 }
0x176e   :  { %v2696_v54 = vmul.f32 %v2694_v44, %v2690_v42  ;;  %v2693_v46 = vmul.f32 %v2685_v45, %v2685_v45 }
0x1770   :  { %v2698_v47 = vmul.f32 0.044715, %v2696_v54  ;;  %v2695_v50 = vmul.f32 %v2693_v46, %v2685_v45 }
0x1772   :  { %v2700_v48 = vadd.f32 %v2698_v47, %v2690_v42  ;;  %v2697_v55 = vmul.f32 0.044715, %v2695_v50 }
0x1774   :  { %v2702_v49 = vmul.f32 0.7978846, %v2700_v48  ;;  %v2699_v51 = vadd.f32 %v2697_v55, %v2685_v45 }
0x1776   :  { %3800 = vtanh.f32 %v2702_v49  ;;  %v2701_v52 = vmul.f32 0.7978846, %v2699_v51 }
0x1778   :  { %3802 = vtanh.f32 %v2701_v52 }
0x1783   :  { %v3801_v53 = vpop.eup %3800 }
0x1784   :  { %v2706_v56 = vadd.f32 1.0, %v3801_v53 }
0x1785   :  { %v3803_v57 = vpop.eup %3802 }
0x1786   :  { %v2705_v58 = vadd.f32 1.0, %v3803_v57  ;;  %v2708_v14 = vmul.f32 0.5, %v2706_v56 }
0x1788   :  { %v2707_v59 = vmul.f32 0.5, %v2705_v58  ;;  %v2710_v61 = vmul.f32 %v2708_v14, %v2690_v42 }
0x178a   :  { %v2709_v60 = vmul.f32 %v2707_v59, %v2685_v45 }
0x178c   :  { %3724 = vmatprep.mubr.msk.f32.mxu1 %vm2286_vm3, %v2709_v60 }
0x178d   :  { %3725 = vmatmul.mubr.msk.f32.vlgmr.msra.gmra.mxu1 %vm2286_vm3, %v2710_v61 }
0x178e   :  { %3731 = vmatprep.mubr.msk.f32.mxu1 %vm3829_vm2, %v3828_v4 }
0x184d   :  { %v3726_v62 = vpop.f32.mrf.mxu1 }
0x184e   :  { %v2795_v0 = vadd.f32 %v3726_v62, %v4788_v37  ;;  %v3077_v37 = vld [vmem:[%s4913_s1 + $0x5f8] ss:$0 sm:$0xff] }
0x184f   :  { %v2785_v2 = vpop.f32.mrf.mxu1  ;;  %v2558_v9 = vadd.f32 %v3077_v37, %v2552_v8 }
0x1850   :  { %v2802_v39 = vadd.f32 %v3085_v18, %v2795_v0  ;;  %v2794_v3 = vadd.f32 %v2785_v2, %v4776_v15 }
0x1852   :  { %v2801_v41 = vadd.f32 %v3085_v18, %v2794_v3  ;;  %3728 = vmatpush3.msra.mxu1 %v2802_v39 }
0x1853   :  { %3729 = vmatprep.subr.mxu1 %v3828_v4  ;;  %v3089_v4 = vld [vmem:[%s4913_s1 + $0x690] ss:$0 sm:$0xff] }
0x1854   :  { %3730 = vmatpush3.msra.mxu1 %v2801_v41 }
0x1855   :  { %3732 = vmatmul.mubr.msk.f32.vlgmr.msra.gmra.mxu1 %vm2286_vm3, %v2803_v7 }
0x1915   :  { %v2873_v11 = vpop.f32.mrf.mxu1 }
0x1916   :  { %v2877_v15 = vadd.f32 %v2873_v11, %v2558_v9 }
0x1917   :  { %v3733_v12 = vpop.f32.mrf.mxu1 }
0x1918   :  { %v2880_v16 = vsel %vm2362_vm4, %v2877_v15, 0.0 }
0x1919   :  { %2881 = vadd.xlane.f32.xlu0 %v2880_v16 }
0x19a2   :  { %v2882_v20 = vpop.xlane.xlu0 %2881 }
0x19a3   :  { %v2883_v21 = vmul.f32 0.03125, %v2882_v20 }
0x19a5   :  { %v2884_v22 = vsub.f32 %v2877_v15, %v2883_v21 }
0x19a7   :  { %v2885_v24 = vmul.f32 %v2884_v22, %v2884_v22 }
0x19a9   :  { %v2886_v23 = vsel %vm2362_vm4, %v2885_v24, 0.0 }
0x19aa   :  { %2887 = vadd.xlane.f32.xlu1 %v2886_v23 }
0x1a33   :  { %v2888_v28 = vpop.xlane.xlu1 %2887 }
0x1a34   :  { %v2889_v6 = vmul.f32 0.03125, %v2888_v28 }
0x1a36   :  { %v2890_v63 = vadd.f32 1e-05, %v2889_v6 }
0x1a38   :  { %3804 = vrsqrt.f32 %v2890_v63 }
0x1a45   :  { %v3805_v5 = vpop.eup %3804 }
0x1a46   :  { %v2892_v17 = vmul.f32 %v3805_v5, %v2884_v22 }
0x1a48   :  { %v2897_v29 = vmul.f32 %v3087_v13, %v2892_v17 }
0x1a4a   :  { %v2902_v1 = vadd.f32 %v3088_v19, %v2897_v29 }
0x1a4c   :  { %3743 = vmatmul.mubr.msk.f32.vlgmr.msra.gmra.mxu0 %vm370_vm0, %v2902_v1 }
0x1b0c   :  { %v2981_v30 = vpop.f32.mrf.mxu0 }
0x1b0d   :  { %v2982_v31 = vadd.f32 %v3089_v4, %v2981_v30 }
0x1b0e   :  { %v3744_v32 = vpop.f32.mrf.mxu0 }
0x1b0f   :  { %2986 = vst.msk [vmem:[#allocation2] sm:$0x3] %vm2985_vm5, %v2982_v31 }
0x1b10   :  { %3817 = shalt.err (!%p3814_p4)
}
0x1b11   :  { %2996 = dma.vmem_to_hbm [thread:$0]  %s2994_s19, 32, %s4915_s3, [#allocation3]  }
0x1b12   :  { %3826 = dma.done.wait [#allocation3], 32  }
0x1b13   :  { %3827 = vsyncadd [#allocation3], 4294967264 }
0x1b14   :  { %3000 = vsyncpa [#allocation3], 1 }

</bundles_post_ra>
